<compile_context>
chip_gen: v7x
topology: tpu7x:2x2x1
jax: 0.10.0
libtpu: 0.0.40
codegen_flags: <defaults>
</compile_context>

<pallas_src>
import functools

import jax
import jax.numpy as jnp
from jax.experimental import pallas as pl
from jax.experimental.pallas import tpu as pltpu

EPS = 1e-5   # torch.nn.GroupNorm default eps
KS = 3       # 3x3 convs, padding=1, stride=1


def _group_norm(v, gamma, beta, *, groups, gsz, HW):
    """GroupNorm over a (C, HW) tile of one sample (fused single pass)."""
    C = groups * gsz
    n = float(gsz * HW)
    rs = jnp.sum(v, axis=1, keepdims=True)            # (C, 1) per-channel sums
    rss = jnp.sum(v * v, axis=1, keepdims=True)       # (C, 1)
    g_sum = jnp.sum(rs.reshape(groups, gsz), axis=1, keepdims=True)    # (G, 1)
    g_ssum = jnp.sum(rss.reshape(groups, gsz), axis=1, keepdims=True)  # (G, 1)
    mean = g_sum / n
    var = g_ssum / n - mean * mean
    inv = jax.lax.rsqrt(var + EPS)
    mean_c = jnp.broadcast_to(mean, (groups, gsz)).reshape(C, 1)
    inv_c = jnp.broadcast_to(inv, (groups, gsz)).reshape(C, 1)
    return (v - mean_c) * inv_c * gamma + beta


def _concat_conv3x3(v, t, masks, w_ref, tmap_ref, b_ref, *, W, HW):
    """ConcatConv2d (prepend constant-t channel, 3x3, pad=1) on the MXU.

    v: (C, HW) activations, masks: (9, HW) zero-padding border masks,
    w_ref: (9, C_out, C_in) per-tap weights, tmap_ref: (C_out, HW) precomputed
    t-channel map, b_ref: (C_out, 1) bias.
    """
    acc = t * tmap_ref[...] + b_ref[...]              # (C, HW)
    for k in range(KS * KS):
        dh, dw = k // KS - 1, k % KS - 1
        d = dh * W + dw
        tap = v if d == 0 else pltpu.roll(v, shift=(-d) % HW, axis=1)
        tap = tap * masks[k:k + 1, :]                 # zero the padded border
        acc = acc + jnp.dot(w_ref[k], tap, preferred_element_type=jnp.float32)
    return acc


def _odefunc_kernel(t_ref, x_ref, m_ref,
                    g1w, g1b, w1, tmap1, b1,
                    g2w, g2b, w2, tmap2, b2,
                    g3w, g3b,
                    out_ref, *, C, H, W, groups):
    HW = H * W
    gsz = C // groups
    t = t_ref[0]
    masks = m_ref[...]                                # (9, HW)
    x = x_ref[0].astype(jnp.float32)                  # (C, HW)

    gn = functools.partial(_group_norm, groups=groups, gsz=gsz, HW=HW)

    h = gn(x, g1w[...], g1b[...])                                   # norm1
    h = jnp.maximum(h, 0.0)                                         # relu
    h = _concat_conv3x3(h, t, masks, w1, tmap1, b1, W=W, HW=HW)     # conv1
    h = gn(h, g2w[...], g2b[...])                                   # norm2
    h = jnp.maximum(h, 0.0)                                         # relu
    h = _concat_conv3x3(h, t, masks, w2, tmap2, b2, W=W, HW=HW)     # conv2
    h = gn(h, g3w[...], g3b[...])                                   # norm3

    out_ref[0] = h.astype(out_ref.dtype)


def _full_spec(shape):
    zeros = (0,) * len(shape)
    return pl.BlockSpec(shape, lambda b: zeros)


def _border_masks(H, W):
    """(9, H*W) masks: 1 where the shifted tap stays inside the image."""
    HW = H * W
    idx = jnp.arange(HW)
    row, col = idx // W, idx % W
    ms = []
    for k in range(KS * KS):
        dh, dw = k // KS - 1, k % KS - 1
        m = ((row + dh >= 0) & (row + dh < H) &
             (col + dw >= 0) & (col + dw < W))
        ms.append(m.astype(jnp.float32))
    return jnp.stack(ms, axis=0)


def odefunc_forward(t, x, params):
    B, C, H, W = x.shape
    HW = H * W
    groups = min(32, C)

    masks = _border_masks(H, W)

    def conv_params(w, b):
        # per-tap (C_out, C_in_x) weight matrices; tap index k = kh*3 + kw
        w_taps = jnp.transpose(w[:, 1:, :, :], (2, 3, 0, 1)).reshape(KS * KS, C, C)
        # constant-t channel folded into a border-corrected additive map
        tmap = jnp.dot(w[:, 0, :, :].reshape(C, KS * KS), masks)     # (C, HW)
        return w_taps, tmap, b.reshape(C, 1)

    w1, tmap1, b1 = conv_params(params["w1"], params["b1"])
    w2, tmap2, b2 = conv_params(params["w2"], params["b2"])
    col = lambda a: a.reshape(C, 1)

    smem = pl.BlockSpec(memory_space=pltpu.MemorySpace.SMEM)
    kernel = functools.partial(_odefunc_kernel, C=C, H=H, W=W, groups=groups)

    out = pl.pallas_call(
        kernel,
        out_shape=jax.ShapeDtypeStruct((B, C, HW), jnp.float32),
        grid=(B,),
        in_specs=[
            smem,                                              # t (1,)
            pl.BlockSpec((1, C, HW), lambda b: (b, 0, 0)),     # x (lane-dense)
            _full_spec((KS * KS, HW)),                         # border masks
            _full_spec((C, 1)), _full_spec((C, 1)),            # gn1 gamma/beta
            _full_spec((KS * KS, C, C)),                       # conv1 tap weights
            _full_spec((C, HW)), _full_spec((C, 1)),           # conv1 t-map / bias
            _full_spec((C, 1)), _full_spec((C, 1)),            # gn2 gamma/beta
            _full_spec((KS * KS, C, C)),                       # conv2 tap weights
            _full_spec((C, HW)), _full_spec((C, 1)),           # conv2 t-map / bias
            _full_spec((C, 1)), _full_spec((C, 1)),            # gn3 gamma/beta
        ],
        out_specs=pl.BlockSpec((1, C, HW), lambda b: (b, 0, 0)),
        compiler_params=pltpu.CompilerParams(
            dimension_semantics=("parallel",)),                # v7x: use both TCs
    )(
        jnp.asarray(t, jnp.float32).reshape(1),
        x.reshape(B, C, HW).astype(jnp.float32),
        masks,
        col(params["g1w"]), col(params["g1b"]), w1, tmap1, b1,
        col(params["g2w"]), col(params["g2b"]), w2, tmap2, b2,
        col(params["g3w"]), col(params["g3b"]),
    )
    return out.reshape(B, C, H, W)


# ---------- pure-JAX reference (for correctness check) ----------
def _ref_group_norm(x, gamma, beta, groups):
    N, C, H, W = x.shape
    gs = C // groups
    xr = x.reshape(N, groups, gs * H * W)
    mean = xr.mean(-1, keepdims=True)
    var = ((xr - mean) ** 2).mean(-1, keepdims=True)
    xn = ((xr - mean) / jnp.sqrt(var + EPS)).reshape(N, C, H, W)
    return xn * gamma[None, :, None, None] + beta[None, :, None, None]


def _ref_concat_conv(t, x, w, b):
    N, C, H, W = x.shape
    tt = jnp.full((N, 1, H, W), t, x.dtype)
    xin = jnp.concatenate([tt, x], axis=1)
    out = jax.lax.conv_general_dilated(
        xin, w, window_strides=(1, 1), padding=((1, 1), (1, 1)),
        dimension_numbers=("NCHW", "OIHW", "NCHW"))
    return out + b[None, :, None, None]


def odefunc_reference(t, x, p):
    groups = min(32, x.shape[1])
    out = _ref_group_norm(x, p["g1w"], p["g1b"], groups)
    out = jnp.maximum(out, 0.0)
    out = _ref_concat_conv(t, out, p["w1"], p["b1"])
    out = _ref_group_norm(out, p["g2w"], p["g2b"], groups)
    out = jnp.maximum(out, 0.0)
    out = _ref_concat_conv(t, out, p["w2"], p["b2"])
    out = _ref_group_norm(out, p["g3w"], p["g3b"], groups)
    return out


if __name__ == "__main__":
    B, C, H, W = 2, 4, 16, 16
    t = 0.5

    key = jax.random.PRNGKey(0)
    ks = jax.random.split(key, 12)
    params = {
        "g1w": 1.0 + 0.1 * jax.random.normal(ks[0], (C,), jnp.float32),
        "g1b": 0.1 * jax.random.normal(ks[1], (C,), jnp.float32),
        "w1": 0.1 * jax.random.normal(ks[2], (C, C + 1, KS, KS), jnp.float32),
        "b1": 0.1 * jax.random.normal(ks[3], (C,), jnp.float32),
        "g2w": 1.0 + 0.1 * jax.random.normal(ks[4], (C,), jnp.float32),
        "g2b": 0.1 * jax.random.normal(ks[5], (C,), jnp.float32),
        "w2": 0.1 * jax.random.normal(ks[6], (C, C + 1, KS, KS), jnp.float32),
        "b2": 0.1 * jax.random.normal(ks[7], (C,), jnp.float32),
        "g3w": 1.0 + 0.1 * jax.random.normal(ks[8], (C,), jnp.float32),
        "g3b": 0.1 * jax.random.normal(ks[9], (C,), jnp.float32),
    }
    x = jax.random.normal(ks[10], (B, C, H, W), jnp.float32)

    out = odefunc_forward(t, x, params)
    out = jax.block_until_ready(out)

    ref = jax.block_until_ready(odefunc_reference(t, x, params))
    assert out.shape == (B, C, H, W)
    assert jnp.allclose(out, ref, rtol=1e-3, atol=1e-3), (
        float(jnp.max(jnp.abs(out - ref))))

    # TODO(synk): self.nfe (python-side call counter) is host state, not kernel work.
    print("KERNEL_OK")
</pallas_src>

<mosaic_0001>
module attributes {stable_mosaic.version = 11 : i64} {
  func.func @_odefunc_kernel(%arg0: i32, %arg1: memref<1xf32, #tpu.memory_space<smem>>, %arg2: memref<1x4x256xf32, #tpu.memory_space<vmem>>, %arg3: memref<9x256xf32, #tpu.memory_space<vmem>>, %arg4: memref<4x1xf32, #tpu.memory_space<vmem>>, %arg5: memref<4x1xf32, #tpu.memory_space<vmem>>, %arg6: memref<9x4x4xf32, #tpu.memory_space<vmem>>, %arg7: memref<4x256xf32, #tpu.memory_space<vmem>>, %arg8: memref<4x1xf32, #tpu.memory_space<vmem>>, %arg9: memref<4x1xf32, #tpu.memory_space<vmem>>, %arg10: memref<4x1xf32, #tpu.memory_space<vmem>>, %arg11: memref<9x4x4xf32, #tpu.memory_space<vmem>>, %arg12: memref<4x256xf32, #tpu.memory_space<vmem>>, %arg13: memref<4x1xf32, #tpu.memory_space<vmem>>, %arg14: memref<4x1xf32, #tpu.memory_space<vmem>>, %arg15: memref<4x1xf32, #tpu.memory_space<vmem>>, %arg16: memref<1x4x256xf32, #tpu.memory_space<vmem>>) attributes {dimension_semantics = [#tpu.dimension_semantics<parallel>], iteration_bounds = array<i64: 2>, scalar_prefetch = 0 : i64, scratch_operands = 0 : i64, tpu.core_type = #tpu.core_type<tc>, window_params = [{transform_indices = @transform_0, window_bounds = array<i64: 1>}, {transform_indices = @transform_1, window_bounds = array<i64: 1, 4, 256>}, {pipeline_mode = #tpu.pipeline_mode<synchronous>, transform_indices = @transform_2, window_bounds = array<i64: 9, 256>}, {pipeline_mode = #tpu.pipeline_mode<synchronous>, transform_indices = @transform_3, window_bounds = array<i64: 4, 1>}, {pipeline_mode = #tpu.pipeline_mode<synchronous>, transform_indices = @transform_4, window_bounds = array<i64: 4, 1>}, {pipeline_mode = #tpu.pipeline_mode<synchronous>, transform_indices = @transform_5, window_bounds = array<i64: 9, 4, 4>}, {pipeline_mode = #tpu.pipeline_mode<synchronous>, transform_indices = @transform_6, window_bounds = array<i64: 4, 256>}, {pipeline_mode = #tpu.pipeline_mode<synchronous>, transform_indices = @transform_7, window_bounds = array<i64: 4, 1>}, {pipeline_mode = #tpu.pipeline_mode<synchronous>, transform_indices = @transform_8, window_bounds = array<i64: 4, 1>}, {pipeline_mode = #tpu.pipeline_mode<synchronous>, transform_indices = @transform_9, window_bounds = array<i64: 4, 1>}, {pipeline_mode = #tpu.pipeline_mode<synchronous>, transform_indices = @transform_10, window_bounds = array<i64: 9, 4, 4>}, {pipeline_mode = #tpu.pipeline_mode<synchronous>, transform_indices = @transform_11, window_bounds = array<i64: 4, 256>}, {pipeline_mode = #tpu.pipeline_mode<synchronous>, transform_indices = @transform_12, window_bounds = array<i64: 4, 1>}, {pipeline_mode = #tpu.pipeline_mode<synchronous>, transform_indices = @transform_13, window_bounds = array<i64: 4, 1>}, {pipeline_mode = #tpu.pipeline_mode<synchronous>, transform_indices = @transform_14, window_bounds = array<i64: 4, 1>}, {transform_indices = @transform_15, window_bounds = array<i64: 1, 4, 256>}]} {
    %c0 = arith.constant 0 : index
    %0 = memref.load %arg1[%c0] : memref<1xf32, #tpu.memory_space<smem>>
    %c0_0 = arith.constant 0 : index
    %c0_1 = arith.constant 0 : index
    %1 = vector.load %arg3[%c0_0, %c0_1] : memref<9x256xf32, #tpu.memory_space<vmem>>, vector<9x256xf32>
    %c0_2 = arith.constant 0 : index
    %c0_3 = arith.constant 0 : index
    %c0_4 = arith.constant 0 : index
    %2 = vector.load %arg2[%c0_2, %c0_3, %c0_4] : memref<1x4x256xf32, #tpu.memory_space<vmem>>, vector<1x4x256xf32>
    %3 = vector.shape_cast %2 : vector<1x4x256xf32> to vector<4x256xf32>
    %c0_5 = arith.constant 0 : index
    %c0_6 = arith.constant 0 : index
    %4 = vector.load %arg4[%c0_5, %c0_6] : memref<4x1xf32, #tpu.memory_space<vmem>>, vector<4x1xf32>
    %c0_7 = arith.constant 0 : index
    %c0_8 = arith.constant 0 : index
    %5 = vector.load %arg5[%c0_7, %c0_8] : memref<4x1xf32, #tpu.memory_space<vmem>>, vector<4x1xf32>
    %cst = arith.constant dense<0.000000e+00> : vector<4xf32>
    %6 = vector.multi_reduction <add>, %3, %cst [1] : vector<4x256xf32> to vector<4xf32>
    %7 = vector.shape_cast %6 : vector<4xf32> to vector<4x1xf32>
    %8 = arith.mulf %3, %3 : vector<4x256xf32>
    %cst_9 = arith.constant dense<0.000000e+00> : vector<4xf32>
    %9 = vector.multi_reduction <add>, %8, %cst_9 [1] : vector<4x256xf32> to vector<4xf32>
    %10 = vector.shape_cast %9 : vector<4xf32> to vector<4x1xf32>
    %cst_10 = arith.constant dense<0.000000e+00> : vector<4xf32>
    %11 = vector.multi_reduction <add>, %7, %cst_10 [1] : vector<4x1xf32> to vector<4xf32>
    %12 = vector.shape_cast %11 : vector<4xf32> to vector<4x1xf32>
    %cst_11 = arith.constant dense<0.000000e+00> : vector<4xf32>
    %13 = vector.multi_reduction <add>, %10, %cst_11 [1] : vector<4x1xf32> to vector<4xf32>
    %14 = vector.shape_cast %13 : vector<4xf32> to vector<4x1xf32>
    %cst_12 = arith.constant 2.560000e+02 : f32
    %15 = vector.broadcast %cst_12 : f32 to vector<4x1xf32>
    %16 = arith.divf %12, %15 : vector<4x1xf32>
    %cst_13 = arith.constant 2.560000e+02 : f32
    %17 = vector.broadcast %cst_13 : f32 to vector<4x1xf32>
    %18 = arith.divf %14, %17 : vector<4x1xf32>
    %19 = arith.mulf %16, %16 : vector<4x1xf32>
    %20 = arith.subf %18, %19 : vector<4x1xf32>
    %cst_14 = arith.constant 9.99999974E-6 : f32
    %21 = vector.broadcast %cst_14 : f32 to vector<4x1xf32>
    %22 = arith.addf %20, %21 : vector<4x1xf32>
    %23 = math.rsqrt %22 : vector<4x1xf32>
    %24 = vector.broadcast %16 : vector<4x1xf32> to vector<4x256xf32>
    %25 = arith.subf %3, %24 : vector<4x256xf32>
    %26 = vector.broadcast %23 : vector<4x1xf32> to vector<4x256xf32>
    %27 = arith.mulf %25, %26 : vector<4x256xf32>
    %28 = vector.broadcast %4 : vector<4x1xf32> to vector<4x256xf32>
    %29 = arith.mulf %27, %28 : vector<4x256xf32>
    %30 = vector.broadcast %5 : vector<4x1xf32> to vector<4x256xf32>
    %31 = arith.addf %29, %30 : vector<4x256xf32>
    %cst_15 = arith.constant 0.000000e+00 : f32
    %32 = vector.broadcast %cst_15 : f32 to vector<4x256xf32>
    %33 = arith.maximumf %31, %32 : vector<4x256xf32>
    %c0_16 = arith.constant 0 : index
    %c0_17 = arith.constant 0 : index
    %34 = vector.load %arg7[%c0_16, %c0_17] : memref<4x256xf32, #tpu.memory_space<vmem>>, vector<4x256xf32>
    %35 = vector.broadcast %0 : f32 to vector<4x256xf32>
    %36 = arith.mulf %35, %34 : vector<4x256xf32>
    %c0_18 = arith.constant 0 : index
    %c0_19 = arith.constant 0 : index
    %37 = vector.load %arg8[%c0_18, %c0_19] : memref<4x1xf32, #tpu.memory_space<vmem>>, vector<4x1xf32>
    %38 = vector.broadcast %37 : vector<4x1xf32> to vector<4x256xf32>
    %39 = arith.addf %36, %38 : vector<4x256xf32>
    %c17_i32 = arith.constant 17 : i32
    %40 = tpu.dynamic_rotate %33 by %c17_i32 dim 1 : vector<4x256xf32>, i32 -> vector<4x256xf32>
    %41 = vector.extract_strided_slice %1 {offsets = [0, 0], sizes = [1, 256], strides = [1, 1]} : vector<9x256xf32> to vector<1x256xf32>
    %42 = vector.broadcast %41 : vector<1x256xf32> to vector<4x256xf32>
    %43 = arith.mulf %40, %42 : vector<4x256xf32>
    %c0_20 = arith.constant 0 : index
    %c0_21 = arith.constant 0 : index
    %c0_22 = arith.constant 0 : index
    %44 = vector.load %arg6[%c0_20, %c0_21, %c0_22] : memref<9x4x4xf32, #tpu.memory_space<vmem>>, vector<1x4x4xf32>
    %45 = vector.shape_cast %44 : vector<1x4x4xf32> to vector<4x4xf32>
    %cst_23 = arith.constant dense<0.000000e+00> : vector<4x256xf32>
    %46 = tpu.matmul %45, %43, %cst_23 {dimension_numbers = #tpu.dot_dimension_numbers<[1], [0], [0], [1], [0, 0, 1, 1], [], []>} : vector<4x4xf32>, vector<4x256xf32>, vector<4x256xf32> -> vector<4x256xf32>
    %47 = arith.addf %39, %46 : vector<4x256xf32>
    %c16_i32 = arith.constant 16 : i32
    %48 = tpu.dynamic_rotate %33 by %c16_i32 dim 1 : vector<4x256xf32>, i32 -> vector<4x256xf32>
    %49 = vector.extract_strided_slice %1 {offsets = [1, 0], sizes = [1, 256], strides = [1, 1]} : vector<9x256xf32> to vector<1x256xf32>
    %50 = vector.broadcast %49 : vector<1x256xf32> to vector<4x256xf32>
    %51 = arith.mulf %48, %50 : vector<4x256xf32>
    %c1 = arith.constant 1 : index
    %c0_24 = arith.constant 0 : index
    %c0_25 = arith.constant 0 : index
    %52 = vector.load %arg6[%c1, %c0_24, %c0_25] : memref<9x4x4xf32, #tpu.memory_space<vmem>>, vector<1x4x4xf32>
    %53 = vector.shape_cast %52 : vector<1x4x4xf32> to vector<4x4xf32>
    %cst_26 = arith.constant dense<0.000000e+00> : vector<4x256xf32>
    %54 = tpu.matmul %53, %51, %cst_26 {dimension_numbers = #tpu.dot_dimension_numbers<[1], [0], [0], [1], [0, 0, 1, 1], [], []>} : vector<4x4xf32>, vector<4x256xf32>, vector<4x256xf32> -> vector<4x256xf32>
    %55 = arith.addf %47, %54 : vector<4x256xf32>
    %c15_i32 = arith.constant 15 : i32
    %56 = tpu.dynamic_rotate %33 by %c15_i32 dim 1 : vector<4x256xf32>, i32 -> vector<4x256xf32>
    %57 = vector.extract_strided_slice %1 {offsets = [2, 0], sizes = [1, 256], strides = [1, 1]} : vector<9x256xf32> to vector<1x256xf32>
    %58 = vector.broadcast %57 : vector<1x256xf32> to vector<4x256xf32>
    %59 = arith.mulf %56, %58 : vector<4x256xf32>
    %c2 = arith.constant 2 : index
    %c0_27 = arith.constant 0 : index
    %c0_28 = arith.constant 0 : index
    %60 = vector.load %arg6[%c2, %c0_27, %c0_28] : memref<9x4x4xf32, #tpu.memory_space<vmem>>, vector<1x4x4xf32>
    %61 = vector.shape_cast %60 : vector<1x4x4xf32> to vector<4x4xf32>
    %cst_29 = arith.constant dense<0.000000e+00> : vector<4x256xf32>
    %62 = tpu.matmul %61, %59, %cst_29 {dimension_numbers = #tpu.dot_dimension_numbers<[1], [0], [0], [1], [0, 0, 1, 1], [], []>} : vector<4x4xf32>, vector<4x256xf32>, vector<4x256xf32> -> vector<4x256xf32>
    %63 = arith.addf %55, %62 : vector<4x256xf32>
    %c1_i32 = arith.constant 1 : i32
    %64 = tpu.dynamic_rotate %33 by %c1_i32 dim 1 : vector<4x256xf32>, i32 -> vector<4x256xf32>
    %65 = vector.extract_strided_slice %1 {offsets = [3, 0], sizes = [1, 256], strides = [1, 1]} : vector<9x256xf32> to vector<1x256xf32>
    %66 = vector.broadcast %65 : vector<1x256xf32> to vector<4x256xf32>
    %67 = arith.mulf %64, %66 : vector<4x256xf32>
    %c3 = arith.constant 3 : index
    %c0_30 = arith.constant 0 : index
    %c0_31 = arith.constant 0 : index
    %68 = vector.load %arg6[%c3, %c0_30, %c0_31] : memref<9x4x4xf32, #tpu.memory_space<vmem>>, vector<1x4x4xf32>
    %69 = vector.shape_cast %68 : vector<1x4x4xf32> to vector<4x4xf32>
    %cst_32 = arith.constant dense<0.000000e+00> : vector<4x256xf32>
    %70 = tpu.matmul %69, %67, %cst_32 {dimension_numbers = #tpu.dot_dimension_numbers<[1], [0], [0], [1], [0, 0, 1, 1], [], []>} : vector<4x4xf32>, vector<4x256xf32>, vector<4x256xf32> -> vector<4x256xf32>
    %71 = arith.addf %63, %70 : vector<4x256xf32>
    %72 = vector.extract_strided_slice %1 {offsets = [4, 0], sizes = [1, 256], strides = [1, 1]} : vector<9x256xf32> to vector<1x256xf32>
    %73 = vector.broadcast %72 : vector<1x256xf32> to vector<4x256xf32>
    %74 = arith.mulf %33, %73 : vector<4x256xf32>
    %c4 = arith.constant 4 : index
    %c0_33 = arith.constant 0 : index
    %c0_34 = arith.constant 0 : index
    %75 = vector.load %arg6[%c4, %c0_33, %c0_34] : memref<9x4x4xf32, #tpu.memory_space<vmem>>, vector<1x4x4xf32>
    %76 = vector.shape_cast %75 : vector<1x4x4xf32> to vector<4x4xf32>
    %cst_35 = arith.constant dense<0.000000e+00> : vector<4x256xf32>
    %77 = tpu.matmul %76, %74, %cst_35 {dimension_numbers = #tpu.dot_dimension_numbers<[1], [0], [0], [1], [0, 0, 1, 1], [], []>} : vector<4x4xf32>, vector<4x256xf32>, vector<4x256xf32> -> vector<4x256xf32>
    %78 = arith.addf %71, %77 : vector<4x256xf32>
    %c255_i32 = arith.constant 255 : i32
    %79 = tpu.dynamic_rotate %33 by %c255_i32 dim 1 : vector<4x256xf32>, i32 -> vector<4x256xf32>
    %80 = vector.extract_strided_slice %1 {offsets = [5, 0], sizes = [1, 256], strides = [1, 1]} : vector<9x256xf32> to vector<1x256xf32>
    %81 = vector.broadcast %80 : vector<1x256xf32> to vector<4x256xf32>
    %82 = arith.mulf %79, %81 : vector<4x256xf32>
    %c5 = arith.constant 5 : index
    %c0_36 = arith.constant 0 : index
    %c0_37 = arith.constant 0 : index
    %83 = vector.load %arg6[%c5, %c0_36, %c0_37] : memref<9x4x4xf32, #tpu.memory_space<vmem>>, vector<1x4x4xf32>
    %84 = vector.shape_cast %83 : vector<1x4x4xf32> to vector<4x4xf32>
    %cst_38 = arith.constant dense<0.000000e+00> : vector<4x256xf32>
    %85 = tpu.matmul %84, %82, %cst_38 {dimension_numbers = #tpu.dot_dimension_numbers<[1], [0], [0], [1], [0, 0, 1, 1], [], []>} : vector<4x4xf32>, vector<4x256xf32>, vector<4x256xf32> -> vector<4x256xf32>
    %86 = arith.addf %78, %85 : vector<4x256xf32>
    %c241_i32 = arith.constant 241 : i32
    %87 = tpu.dynamic_rotate %33 by %c241_i32 dim 1 : vector<4x256xf32>, i32 -> vector<4x256xf32>
    %88 = vector.extract_strided_slice %1 {offsets = [6, 0], sizes = [1, 256], strides = [1, 1]} : vector<9x256xf32> to vector<1x256xf32>
    %89 = vector.broadcast %88 : vector<1x256xf32> to vector<4x256xf32>
    %90 = arith.mulf %87, %89 : vector<4x256xf32>
    %c6 = arith.constant 6 : index
    %c0_39 = arith.constant 0 : index
    %c0_40 = arith.constant 0 : index
    %91 = vector.load %arg6[%c6, %c0_39, %c0_40] : memref<9x4x4xf32, #tpu.memory_space<vmem>>, vector<1x4x4xf32>
    %92 = vector.shape_cast %91 : vector<1x4x4xf32> to vector<4x4xf32>
    %cst_41 = arith.constant dense<0.000000e+00> : vector<4x256xf32>
    %93 = tpu.matmul %92, %90, %cst_41 {dimension_numbers = #tpu.dot_dimension_numbers<[1], [0], [0], [1], [0, 0, 1, 1], [], []>} : vector<4x4xf32>, vector<4x256xf32>, vector<4x256xf32> -> vector<4x256xf32>
    %94 = arith.addf %86, %93 : vector<4x256xf32>
    %c240_i32 = arith.constant 240 : i32
    %95 = tpu.dynamic_rotate %33 by %c240_i32 dim 1 : vector<4x256xf32>, i32 -> vector<4x256xf32>
    %96 = vector.extract_strided_slice %1 {offsets = [7, 0], sizes = [1, 256], strides = [1, 1]} : vector<9x256xf32> to vector<1x256xf32>
    %97 = vector.broadcast %96 : vector<1x256xf32> to vector<4x256xf32>
    %98 = arith.mulf %95, %97 : vector<4x256xf32>
    %c7 = arith.constant 7 : index
    %c0_42 = arith.constant 0 : index
    %c0_43 = arith.constant 0 : index
    %99 = vector.load %arg6[%c7, %c0_42, %c0_43] : memref<9x4x4xf32, #tpu.memory_space<vmem>>, vector<1x4x4xf32>
    %100 = vector.shape_cast %99 : vector<1x4x4xf32> to vector<4x4xf32>
    %cst_44 = arith.constant dense<0.000000e+00> : vector<4x256xf32>
    %101 = tpu.matmul %100, %98, %cst_44 {dimension_numbers = #tpu.dot_dimension_numbers<[1], [0], [0], [1], [0, 0, 1, 1], [], []>} : vector<4x4xf32>, vector<4x256xf32>, vector<4x256xf32> -> vector<4x256xf32>
    %102 = arith.addf %94, %101 : vector<4x256xf32>
    %c239_i32 = arith.constant 239 : i32
    %103 = tpu.dynamic_rotate %33 by %c239_i32 dim 1 : vector<4x256xf32>, i32 -> vector<4x256xf32>
    %104 = vector.extract_strided_slice %1 {offsets = [8, 0], sizes = [1, 256], strides = [1, 1]} : vector<9x256xf32> to vector<1x256xf32>
    %105 = vector.broadcast %104 : vector<1x256xf32> to vector<4x256xf32>
    %106 = arith.mulf %103, %105 : vector<4x256xf32>
    %c8 = arith.constant 8 : index
    %c0_45 = arith.constant 0 : index
    %c0_46 = arith.constant 0 : index
    %107 = vector.load %arg6[%c8, %c0_45, %c0_46] : memref<9x4x4xf32, #tpu.memory_space<vmem>>, vector<1x4x4xf32>
    %108 = vector.shape_cast %107 : vector<1x4x4xf32> to vector<4x4xf32>
    %cst_47 = arith.constant dense<0.000000e+00> : vector<4x256xf32>
    %109 = tpu.matmul %108, %106, %cst_47 {dimension_numbers = #tpu.dot_dimension_numbers<[1], [0], [0], [1], [0, 0, 1, 1], [], []>} : vector<4x4xf32>, vector<4x256xf32>, vector<4x256xf32> -> vector<4x256xf32>
    %110 = arith.addf %102, %109 : vector<4x256xf32>
    %c0_48 = arith.constant 0 : index
    %c0_49 = arith.constant 0 : index
    %111 = vector.load %arg9[%c0_48, %c0_49] : memref<4x1xf32, #tpu.memory_space<vmem>>, vector<4x1xf32>
    %c0_50 = arith.constant 0 : index
    %c0_51 = arith.constant 0 : index
    %112 = vector.load %arg10[%c0_50, %c0_51] : memref<4x1xf32, #tpu.memory_space<vmem>>, vector<4x1xf32>
    %cst_52 = arith.constant dense<0.000000e+00> : vector<4xf32>
    %113 = vector.multi_reduction <add>, %110, %cst_52 [1] : vector<4x256xf32> to vector<4xf32>
    %114 = vector.shape_cast %113 : vector<4xf32> to vector<4x1xf32>
    %115 = arith.mulf %110, %110 : vector<4x256xf32>
    %cst_53 = arith.constant dense<0.000000e+00> : vector<4xf32>
    %116 = vector.multi_reduction <add>, %115, %cst_53 [1] : vector<4x256xf32> to vector<4xf32>
    %117 = vector.shape_cast %116 : vector<4xf32> to vector<4x1xf32>
    %cst_54 = arith.constant dense<0.000000e+00> : vector<4xf32>
    %118 = vector.multi_reduction <add>, %114, %cst_54 [1] : vector<4x1xf32> to vector<4xf32>
    %119 = vector.shape_cast %118 : vector<4xf32> to vector<4x1xf32>
    %cst_55 = arith.constant dense<0.000000e+00> : vector<4xf32>
    %120 = vector.multi_reduction <add>, %117, %cst_55 [1] : vector<4x1xf32> to vector<4xf32>
    %121 = vector.shape_cast %120 : vector<4xf32> to vector<4x1xf32>
    %cst_56 = arith.constant 2.560000e+02 : f32
    %122 = vector.broadcast %cst_56 : f32 to vector<4x1xf32>
    %123 = arith.divf %119, %122 : vector<4x1xf32>
    %cst_57 = arith.constant 2.560000e+02 : f32
    %124 = vector.broadcast %cst_57 : f32 to vector<4x1xf32>
    %125 = arith.divf %121, %124 : vector<4x1xf32>
    %126 = arith.mulf %123, %123 : vector<4x1xf32>
    %127 = arith.subf %125, %126 : vector<4x1xf32>
    %cst_58 = arith.constant 9.99999974E-6 : f32
    %128 = vector.broadcast %cst_58 : f32 to vector<4x1xf32>
    %129 = arith.addf %127, %128 : vector<4x1xf32>
    %130 = math.rsqrt %129 : vector<4x1xf32>
    %131 = vector.broadcast %123 : vector<4x1xf32> to vector<4x256xf32>
    %132 = arith.subf %110, %131 : vector<4x256xf32>
    %133 = vector.broadcast %130 : vector<4x1xf32> to vector<4x256xf32>
    %134 = arith.mulf %132, %133 : vector<4x256xf32>
    %135 = vector.broadcast %111 : vector<4x1xf32> to vector<4x256xf32>
    %136 = arith.mulf %134, %135 : vector<4x256xf32>
    %137 = vector.broadcast %112 : vector<4x1xf32> to vector<4x256xf32>
    %138 = arith.addf %136, %137 : vector<4x256xf32>
    %cst_59 = arith.constant 0.000000e+00 : f32
    %139 = vector.broadcast %cst_59 : f32 to vector<4x256xf32>
    %140 = arith.maximumf %138, %139 : vector<4x256xf32>
    %c0_60 = arith.constant 0 : index
    %c0_61 = arith.constant 0 : index
    %141 = vector.load %arg12[%c0_60, %c0_61] : memref<4x256xf32, #tpu.memory_space<vmem>>, vector<4x256xf32>
    %142 = vector.broadcast %0 : f32 to vector<4x256xf32>
    %143 = arith.mulf %142, %141 : vector<4x256xf32>
    %c0_62 = arith.constant 0 : index
    %c0_63 = arith.constant 0 : index
    %144 = vector.load %arg13[%c0_62, %c0_63] : memref<4x1xf32, #tpu.memory_space<vmem>>, vector<4x1xf32>
    %145 = vector.broadcast %144 : vector<4x1xf32> to vector<4x256xf32>
    %146 = arith.addf %143, %145 : vector<4x256xf32>
    %c17_i32_64 = arith.constant 17 : i32
    %147 = tpu.dynamic_rotate %140 by %c17_i32_64 dim 1 : vector<4x256xf32>, i32 -> vector<4x256xf32>
    %148 = vector.extract_strided_slice %1 {offsets = [0, 0], sizes = [1, 256], strides = [1, 1]} : vector<9x256xf32> to vector<1x256xf32>
    %149 = vector.broadcast %148 : vector<1x256xf32> to vector<4x256xf32>
    %150 = arith.mulf %147, %149 : vector<4x256xf32>
    %c0_65 = arith.constant 0 : index
    %c0_66 = arith.constant 0 : index
    %c0_67 = arith.constant 0 : index
    %151 = vector.load %arg11[%c0_65, %c0_66, %c0_67] : memref<9x4x4xf32, #tpu.memory_space<vmem>>, vector<1x4x4xf32>
    %152 = vector.shape_cast %151 : vector<1x4x4xf32> to vector<4x4xf32>
    %cst_68 = arith.constant dense<0.000000e+00> : vector<4x256xf32>
    %153 = tpu.matmul %152, %150, %cst_68 {dimension_numbers = #tpu.dot_dimension_numbers<[1], [0], [0], [1], [0, 0, 1, 1], [], []>} : vector<4x4xf32>, vector<4x256xf32>, vector<4x256xf32> -> vector<4x256xf32>
    %154 = arith.addf %146, %153 : vector<4x256xf32>
    %c16_i32_69 = arith.constant 16 : i32
    %155 = tpu.dynamic_rotate %140 by %c16_i32_69 dim 1 : vector<4x256xf32>, i32 -> vector<4x256xf32>
    %156 = vector.extract_strided_slice %1 {offsets = [1, 0], sizes = [1, 256], strides = [1, 1]} : vector<9x256xf32> to vector<1x256xf32>
    %157 = vector.broadcast %156 : vector<1x256xf32> to vector<4x256xf32>
    %158 = arith.mulf %155, %157 : vector<4x256xf32>
    %c1_70 = arith.constant 1 : index
    %c0_71 = arith.constant 0 : index
    %c0_72 = arith.constant 0 : index
    %159 = vector.load %arg11[%c1_70, %c0_71, %c0_72] : memref<9x4x4xf32, #tpu.memory_space<vmem>>, vector<1x4x4xf32>
    %160 = vector.shape_cast %159 : vector<1x4x4xf32> to vector<4x4xf32>
    %cst_73 = arith.constant dense<0.000000e+00> : vector<4x256xf32>
    %161 = tpu.matmul %160, %158, %cst_73 {dimension_numbers = #tpu.dot_dimension_numbers<[1], [0], [0], [1], [0, 0, 1, 1], [], []>} : vector<4x4xf32>, vector<4x256xf32>, vector<4x256xf32> -> vector<4x256xf32>
    %162 = arith.addf %154, %161 : vector<4x256xf32>
    %c15_i32_74 = arith.constant 15 : i32
    %163 = tpu.dynamic_rotate %140 by %c15_i32_74 dim 1 : vector<4x256xf32>, i32 -> vector<4x256xf32>
    %164 = vector.extract_strided_slice %1 {offsets = [2, 0], sizes = [1, 256], strides = [1, 1]} : vector<9x256xf32> to vector<1x256xf32>
    %165 = vector.broadcast %164 : vector<1x256xf32> to vector<4x256xf32>
    %166 = arith.mulf %163, %165 : vector<4x256xf32>
    %c2_75 = arith.constant 2 : index
    %c0_76 = arith.constant 0 : index
    %c0_77 = arith.constant 0 : index
    %167 = vector.load %arg11[%c2_75, %c0_76, %c0_77] : memref<9x4x4xf32, #tpu.memory_space<vmem>>, vector<1x4x4xf32>
    %168 = vector.shape_cast %167 : vector<1x4x4xf32> to vector<4x4xf32>
    %cst_78 = arith.constant dense<0.000000e+00> : vector<4x256xf32>
    %169 = tpu.matmul %168, %166, %cst_78 {dimension_numbers = #tpu.dot_dimension_numbers<[1], [0], [0], [1], [0, 0, 1, 1], [], []>} : vector<4x4xf32>, vector<4x256xf32>, vector<4x256xf32> -> vector<4x256xf32>
    %170 = arith.addf %162, %169 : vector<4x256xf32>
    %c1_i32_79 = arith.constant 1 : i32
    %171 = tpu.dynamic_rotate %140 by %c1_i32_79 dim 1 : vector<4x256xf32>, i32 -> vector<4x256xf32>
    %172 = vector.extract_strided_slice %1 {offsets = [3, 0], sizes = [1, 256], strides = [1, 1]} : vector<9x256xf32> to vector<1x256xf32>
    %173 = vector.broadcast %172 : vector<1x256xf32> to vector<4x256xf32>
    %174 = arith.mulf %171, %173 : vector<4x256xf32>
    %c3_80 = arith.constant 3 : index
    %c0_81 = arith.constant 0 : index
    %c0_82 = arith.constant 0 : index
    %175 = vector.load %arg11[%c3_80, %c0_81, %c0_82] : memref<9x4x4xf32, #tpu.memory_space<vmem>>, vector<1x4x4xf32>
    %176 = vector.shape_cast %175 : vector<1x4x4xf32> to vector<4x4xf32>
    %cst_83 = arith.constant dense<0.000000e+00> : vector<4x256xf32>
    %177 = tpu.matmul %176, %174, %cst_83 {dimension_numbers = #tpu.dot_dimension_numbers<[1], [0], [0], [1], [0, 0, 1, 1], [], []>} : vector<4x4xf32>, vector<4x256xf32>, vector<4x256xf32> -> vector<4x256xf32>
    %178 = arith.addf %170, %177 : vector<4x256xf32>
    %179 = vector.extract_strided_slice %1 {offsets = [4, 0], sizes = [1, 256], strides = [1, 1]} : vector<9x256xf32> to vector<1x256xf32>
    %180 = vector.broadcast %179 : vector<1x256xf32> to vector<4x256xf32>
    %181 = arith.mulf %140, %180 : vector<4x256xf32>
    %c4_84 = arith.constant 4 : index
    %c0_85 = arith.constant 0 : index
    %c0_86 = arith.constant 0 : index
    %182 = vector.load %arg11[%c4_84, %c0_85, %c0_86] : memref<9x4x4xf32, #tpu.memory_space<vmem>>, vector<1x4x4xf32>
    %183 = vector.shape_cast %182 : vector<1x4x4xf32> to vector<4x4xf32>
    %cst_87 = arith.constant dense<0.000000e+00> : vector<4x256xf32>
    %184 = tpu.matmul %183, %181, %cst_87 {dimension_numbers = #tpu.dot_dimension_numbers<[1], [0], [0], [1], [0, 0, 1, 1], [], []>} : vector<4x4xf32>, vector<4x256xf32>, vector<4x256xf32> -> vector<4x256xf32>
    %185 = arith.addf %178, %184 : vector<4x256xf32>
    %c255_i32_88 = arith.constant 255 : i32
    %186 = tpu.dynamic_rotate %140 by %c255_i32_88 dim 1 : vector<4x256xf32>, i32 -> vector<4x256xf32>
    %187 = vector.extract_strided_slice %1 {offsets = [5, 0], sizes = [1, 256], strides = [1, 1]} : vector<9x256xf32> to vector<1x256xf32>
    %188 = vector.broadcast %187 : vector<1x256xf32> to vector<4x256xf32>
    %189 = arith.mulf %186, %188 : vector<4x256xf32>
    %c5_89 = arith.constant 5 : index
    %c0_90 = arith.constant 0 : index
    %c0_91 = arith.constant 0 : index
    %190 = vector.load %arg11[%c5_89, %c0_90, %c0_91] : memref<9x4x4xf32, #tpu.memory_space<vmem>>, vector<1x4x4xf32>
    %191 = vector.shape_cast %190 : vector<1x4x4xf32> to vector<4x4xf32>
    %cst_92 = arith.constant dense<0.000000e+00> : vector<4x256xf32>
    %192 = tpu.matmul %191, %189, %cst_92 {dimension_numbers = #tpu.dot_dimension_numbers<[1], [0], [0], [1], [0, 0, 1, 1], [], []>} : vector<4x4xf32>, vector<4x256xf32>, vector<4x256xf32> -> vector<4x256xf32>
    %193 = arith.addf %185, %192 : vector<4x256xf32>
    %c241_i32_93 = arith.constant 241 : i32
    %194 = tpu.dynamic_rotate %140 by %c241_i32_93 dim 1 : vector<4x256xf32>, i32 -> vector<4x256xf32>
    %195 = vector.extract_strided_slice %1 {offsets = [6, 0], sizes = [1, 256], strides = [1, 1]} : vector<9x256xf32> to vector<1x256xf32>
    %196 = vector.broadcast %195 : vector<1x256xf32> to vector<4x256xf32>
    %197 = arith.mulf %194, %196 : vector<4x256xf32>
    %c6_94 = arith.constant 6 : index
    %c0_95 = arith.constant 0 : index
    %c0_96 = arith.constant 0 : index
    %198 = vector.load %arg11[%c6_94, %c0_95, %c0_96] : memref<9x4x4xf32, #tpu.memory_space<vmem>>, vector<1x4x4xf32>
    %199 = vector.shape_cast %198 : vector<1x4x4xf32> to vector<4x4xf32>
    %cst_97 = arith.constant dense<0.000000e+00> : vector<4x256xf32>
    %200 = tpu.matmul %199, %197, %cst_97 {dimension_numbers = #tpu.dot_dimension_numbers<[1], [0], [0], [1], [0, 0, 1, 1], [], []>} : vector<4x4xf32>, vector<4x256xf32>, vector<4x256xf32> -> vector<4x256xf32>
    %201 = arith.addf %193, %200 : vector<4x256xf32>
    %c240_i32_98 = arith.constant 240 : i32
    %202 = tpu.dynamic_rotate %140 by %c240_i32_98 dim 1 : vector<4x256xf32>, i32 -> vector<4x256xf32>
    %203 = vector.extract_strided_slice %1 {offsets = [7, 0], sizes = [1, 256], strides = [1, 1]} : vector<9x256xf32> to vector<1x256xf32>
    %204 = vector.broadcast %203 : vector<1x256xf32> to vector<4x256xf32>
    %205 = arith.mulf %202, %204 : vector<4x256xf32>
    %c7_99 = arith.constant 7 : index
    %c0_100 = arith.constant 0 : index
    %c0_101 = arith.constant 0 : index
    %206 = vector.load %arg11[%c7_99, %c0_100, %c0_101] : memref<9x4x4xf32, #tpu.memory_space<vmem>>, vector<1x4x4xf32>
    %207 = vector.shape_cast %206 : vector<1x4x4xf32> to vector<4x4xf32>
    %cst_102 = arith.constant dense<0.000000e+00> : vector<4x256xf32>
    %208 = tpu.matmul %207, %205, %cst_102 {dimension_numbers = #tpu.dot_dimension_numbers<[1], [0], [0], [1], [0, 0, 1, 1], [], []>} : vector<4x4xf32>, vector<4x256xf32>, vector<4x256xf32> -> vector<4x256xf32>
    %209 = arith.addf %201, %208 : vector<4x256xf32>
    %c239_i32_103 = arith.constant 239 : i32
    %210 = tpu.dynamic_rotate %140 by %c239_i32_103 dim 1 : vector<4x256xf32>, i32 -> vector<4x256xf32>
    %211 = vector.extract_strided_slice %1 {offsets = [8, 0], sizes = [1, 256], strides = [1, 1]} : vector<9x256xf32> to vector<1x256xf32>
    %212 = vector.broadcast %211 : vector<1x256xf32> to vector<4x256xf32>
    %213 = arith.mulf %210, %212 : vector<4x256xf32>
    %c8_104 = arith.constant 8 : index
    %c0_105 = arith.constant 0 : index
    %c0_106 = arith.constant 0 : index
    %214 = vector.load %arg11[%c8_104, %c0_105, %c0_106] : memref<9x4x4xf32, #tpu.memory_space<vmem>>, vector<1x4x4xf32>
    %215 = vector.shape_cast %214 : vector<1x4x4xf32> to vector<4x4xf32>
    %cst_107 = arith.constant dense<0.000000e+00> : vector<4x256xf32>
    %216 = tpu.matmul %215, %213, %cst_107 {dimension_numbers = #tpu.dot_dimension_numbers<[1], [0], [0], [1], [0, 0, 1, 1], [], []>} : vector<4x4xf32>, vector<4x256xf32>, vector<4x256xf32> -> vector<4x256xf32>
    %217 = arith.addf %209, %216 : vector<4x256xf32>
    %c0_108 = arith.constant 0 : index
    %c0_109 = arith.constant 0 : index
    %218 = vector.load %arg14[%c0_108, %c0_109] : memref<4x1xf32, #tpu.memory_space<vmem>>, vector<4x1xf32>
    %c0_110 = arith.constant 0 : index
    %c0_111 = arith.constant 0 : index
    %219 = vector.load %arg15[%c0_110, %c0_111] : memref<4x1xf32, #tpu.memory_space<vmem>>, vector<4x1xf32>
    %cst_112 = arith.constant dense<0.000000e+00> : vector<4xf32>
    %220 = vector.multi_reduction <add>, %217, %cst_112 [1] : vector<4x256xf32> to vector<4xf32>
    %221 = vector.shape_cast %220 : vector<4xf32> to vector<4x1xf32>
    %222 = arith.mulf %217, %217 : vector<4x256xf32>
    %cst_113 = arith.constant dense<0.000000e+00> : vector<4xf32>
    %223 = vector.multi_reduction <add>, %222, %cst_113 [1] : vector<4x256xf32> to vector<4xf32>
    %224 = vector.shape_cast %223 : vector<4xf32> to vector<4x1xf32>
    %cst_114 = arith.constant dense<0.000000e+00> : vector<4xf32>
    %225 = vector.multi_reduction <add>, %221, %cst_114 [1] : vector<4x1xf32> to vector<4xf32>
    %226 = vector.shape_cast %225 : vector<4xf32> to vector<4x1xf32>
    %cst_115 = arith.constant dense<0.000000e+00> : vector<4xf32>
    %227 = vector.multi_reduction <add>, %224, %cst_115 [1] : vector<4x1xf32> to vector<4xf32>
    %228 = vector.shape_cast %227 : vector<4xf32> to vector<4x1xf32>
    %cst_116 = arith.constant 2.560000e+02 : f32
    %229 = vector.broadcast %cst_116 : f32 to vector<4x1xf32>
    %230 = arith.divf %226, %229 : vector<4x1xf32>
    %cst_117 = arith.constant 2.560000e+02 : f32
    %231 = vector.broadcast %cst_117 : f32 to vector<4x1xf32>
    %232 = arith.divf %228, %231 : vector<4x1xf32>
    %233 = arith.mulf %230, %230 : vector<4x1xf32>
    %234 = arith.subf %232, %233 : vector<4x1xf32>
    %cst_118 = arith.constant 9.99999974E-6 : f32
    %235 = vector.broadcast %cst_118 : f32 to vector<4x1xf32>
    %236 = arith.addf %234, %235 : vector<4x1xf32>
    %237 = math.rsqrt %236 : vector<4x1xf32>
    %238 = vector.broadcast %230 : vector<4x1xf32> to vector<4x256xf32>
    %239 = arith.subf %217, %238 : vector<4x256xf32>
    %240 = vector.broadcast %237 : vector<4x1xf32> to vector<4x256xf32>
    %241 = arith.mulf %239, %240 : vector<4x256xf32>
    %242 = vector.broadcast %218 : vector<4x1xf32> to vector<4x256xf32>
    %243 = arith.mulf %241, %242 : vector<4x256xf32>
    %244 = vector.broadcast %219 : vector<4x1xf32> to vector<4x256xf32>
    %245 = arith.addf %243, %244 : vector<4x256xf32>
    %c0_119 = arith.constant 0 : index
    %c0_120 = arith.constant 0 : index
    %c0_121 = arith.constant 0 : index
    %246 = vector.load %arg16[%c0_119, %c0_120, %c0_121] : memref<1x4x256xf32, #tpu.memory_space<vmem>>, vector<1x4x256xf32>
    %247 = vector.shape_cast %246 : vector<1x4x256xf32> to vector<4x256xf32>
    %248 = vector.shape_cast %245 : vector<4x256xf32> to vector<1x4x256xf32>
    tpu.vector_store %arg16[%c0_119, %c0_120, %c0_121], %248 {strides = array<i32>} : memref<1x4x256xf32, #tpu.memory_space<vmem>>, vector<1x4x256xf32>,
    return
  }
  func.func @transform_0(%arg0: i32) -> i32 {
    %c0_i32 = arith.constant 0 : i32
    %c0_i32_0 = arith.constant 0 : i32
    return %c0_i32 : i32
  }
  func.func @transform_1(%arg0: i32) -> (i32, i32, i32) {
    %c0_i32 = arith.constant 0 : i32
    %c0_i32_0 = arith.constant 0 : i32
    %c0_i32_1 = arith.constant 0 : i32
    return %arg0, %c0_i32, %c0_i32_0 : i32, i32, i32
  }
  func.func @transform_2(%arg0: i32) -> (i32, i32) {
    %c0_i32 = arith.constant 0 : i32
    %c0_i32_0 = arith.constant 0 : i32
    %c0_i32_1 = arith.constant 0 : i32
    return %c0_i32, %c0_i32_0 : i32, i32
  }
  func.func @transform_3(%arg0: i32) -> (i32, i32) {
    %c0_i32 = arith.constant 0 : i32
    %c0_i32_0 = arith.constant 0 : i32
    %c0_i32_1 = arith.constant 0 : i32
    return %c0_i32, %c0_i32_0 : i32, i32
  }
  func.func @transform_4(%arg0: i32) -> (i32, i32) {
    %c0_i32 = arith.constant 0 : i32
    %c0_i32_0 = arith.constant 0 : i32
    %c0_i32_1 = arith.constant 0 : i32
    return %c0_i32, %c0_i32_0 : i32, i32
  }
  func.func @transform_5(%arg0: i32) -> (i32, i32, i32) {
    %c0_i32 = arith.constant 0 : i32
    %c0_i32_0 = arith.constant 0 : i32
    %c0_i32_1 = arith.constant 0 : i32
    %c0_i32_2 = arith.constant 0 : i32
    return %c0_i32, %c0_i32_0, %c0_i32_1 : i32, i32, i32
  }
  func.func @transform_6(%arg0: i32) -> (i32, i32) {
    %c0_i32 = arith.constant 0 : i32
    %c0_i32_0 = arith.constant 0 : i32
    %c0_i32_1 = arith.constant 0 : i32
    return %c0_i32, %c0_i32_0 : i32, i32
  }
  func.func @transform_7(%arg0: i32) -> (i32, i32) {
    %c0_i32 = arith.constant 0 : i32
    %c0_i32_0 = arith.constant 0 : i32
    %c0_i32_1 = arith.constant 0 : i32
    return %c0_i32, %c0_i32_0 : i32, i32
  }
  func.func @transform_8(%arg0: i32) -> (i32, i32) {
    %c0_i32 = arith.constant 0 : i32
    %c0_i32_0 = arith.constant 0 : i32
    %c0_i32_1 = arith.constant 0 : i32
    return %c0_i32, %c0_i32_0 : i32, i32
  }
  func.func @transform_9(%arg0: i32) -> (i32, i32) {
    %c0_i32 = arith.constant 0 : i32
    %c0_i32_0 = arith.constant 0 : i32
    %c0_i32_1 = arith.constant 0 : i32
    return %c0_i32, %c0_i32_0 : i32, i32
  }
  func.func @transform_10(%arg0: i32) -> (i32, i32, i32) {
    %c0_i32 = arith.constant 0 : i32
    %c0_i32_0 = arith.constant 0 : i32
    %c0_i32_1 = arith.constant 0 : i32
    %c0_i32_2 = arith.constant 0 : i32
    return %c0_i32, %c0_i32_0, %c0_i32_1 : i32, i32, i32
  }
  func.func @transform_11(%arg0: i32) -> (i32, i32) {
    %c0_i32 = arith.constant 0 : i32
    %c0_i32_0 = arith.constant 0 : i32
    %c0_i32_1 = arith.constant 0 : i32
    return %c0_i32, %c0_i32_0 : i32, i32
  }
  func.func @transform_12(%arg0: i32) -> (i32, i32) {
    %c0_i32 = arith.constant 0 : i32
    %c0_i32_0 = arith.constant 0 : i32
    %c0_i32_1 = arith.constant 0 : i32
    return %c0_i32, %c0_i32_0 : i32, i32
  }
  func.func @transform_13(%arg0: i32) -> (i32, i32) {
    %c0_i32 = arith.constant 0 : i32
    %c0_i32_0 = arith.constant 0 : i32
    %c0_i32_1 = arith.constant 0 : i32
    return %c0_i32, %c0_i32_0 : i32, i32
  }
  func.func @transform_14(%arg0: i32) -> (i32, i32) {
    %c0_i32 = arith.constant 0 : i32
    %c0_i32_0 = arith.constant 0 : i32
    %c0_i32_1 = arith.constant 0 : i32
    return %c0_i32, %c0_i32_0 : i32, i32
  }
  func.func @transform_15(%arg0: i32) -> (i32, i32, i32) {
    %c0_i32 = arith.constant 0 : i32
    %c0_i32_0 = arith.constant 0 : i32
    %c0_i32_1 = arith.constant 0 : i32
    return %arg0, %c0_i32, %c0_i32_0 : i32, i32, i32
  }
}

</mosaic_0001>

<bundles_post_ra>
// kernel: tpu_custom_call.1
= control target key start
LH: loop header
LB: loop body
LE: loop exit
PB: predicated region body
PF: predicated region fallthrough
CT: control target
= control target key end

     0   :  { %s3447_s0 = inlined_call_operand.<no memory space> [shape: f32[1], index: 0, kind: input, shape index: {}]   ;;  %s3448_s1 = inlined_call_operand.vmem [shape: f32[2,4,256], index: 1, kind: input, shape index: {}]   ;;  %s3449_s2 = inlined_call_operand.vmem [shape: f32[9,256], index: 2, kind: input, shape index: {}]   ;;  %s3450_s3 = inlined_call_operand.vmem [shape: f32[4,1], index: 3, kind: input, shape index: {}]   ;;  %s3451_s4 = inlined_call_operand.vmem [shape: f32[4,1], index: 4, kind: input, shape index: {}]   ;;  %s3452_s5 = inlined_call_operand.vmem [shape: f32[9,4,4], index: 5, kind: input, shape index: {}]   ;;  %s3453_s6 = inlined_call_operand.vmem [shape: f32[4,256], index: 6, kind: input, shape index: {}]   ;;  %s3454_s7 = inlined_call_operand.vmem [shape: f32[4,1], index: 7, kind: input, shape index: {}]   ;;  %s3455_s8 = inlined_call_operand.vmem [shape: f32[4,1], index: 8, kind: input, shape index: {}]   ;;  %s3456_s9 = inlined_call_operand.vmem [shape: f32[4,1], index: 9, kind: input, shape index: {}]   ;;  %s3457_s10 = inlined_call_operand.vmem [shape: f32[9,4,4], index: 10, kind: input, shape index: {}]   ;;  %s3458_s11 = inlined_call_operand.vmem [shape: f32[4,256], index: 11, kind: input, shape index: {}]   ;;  %s3459_s12 = inlined_call_operand.vmem [shape: f32[4,1], index: 12, kind: input, shape index: {}]   ;;  %s3460_s13 = inlined_call_operand.vmem [shape: f32[4,1], index: 13, kind: input, shape index: {}]   ;;  %s3461_s14 = inlined_call_operand.vmem [shape: f32[4,1], index: 14, kind: input, shape index: {}]   ;;  %s3462_s15 = inlined_call_operand.hbm [shape: f32[2,4,256], index: 15, kind: output, shape index: {}]  }
   0x1   :  { %3478 = sst [smem:[#allocation8_spill]] %s3448_s1 }
   0x2   :  { %3479 = sst [smem:[#allocation9_spill]] %s3449_s2 }
   0x3   :  { %20 = sst [smem:[#allocation2]] %s3447_s0 }
   0x4   :  { %21 = vsyncpa [#allocation4], 0 }
   0x5   :  { %23 = vsyncpa [#allocation4 + $0x1], 0  ;;  %s2922_s20 = smov 0   ;;  %s2924_s21 = smov 0  }
   0x6   :  { %s2926_s22 = smov 0   ;;  %s2928_s23 = smov 0  }
   0x7 LB: > { %3480 = sst [smem:[#allocation6_spill]] %s2821_s22  ;;  %s2943_s0 = sadd.s32 4294967295, %s2825_s23   ;;  %s2825_s23 = sphi %s2928_s23, %s3497_s23   ;;  %s2821_s22 = sphi %s2926_s22, %s3494_s22   ;;  %s2817_s21 = sphi %s2924_s21, %s3496_s21   ;;  %s2813_s20 = sphi %s2922_s20, %s3495_s20  }
   0x8   : > { %s2618_s24 = sadd.s32 4294967294, %s2825_s23   ;;  %s2947_s25 = sadd.s32 1, %s2825_s23  }
   0x9   : > { %s356_s26 = sadd.s32 1, %s2821_s22  ;;  %s353_s27 = ssub.s32 %s2825_s23, %s2947_s25 }
   0xa   : > { %p366_p0 = scmp.ne.s32.totalorder %s2821_s22, %s2817_s21  ;;  %p354_p1 = scmp.eq.s32.totalorder %s353_s27, 0 }
   0xb   : > { %p367_p2 = scmp.eq.s32.totalorder %s2943_s0, 1  ;;  %p372_p3 = scmp.ne.s32.totalorder %s2817_s21, %s2813_s20 }
   0xc   : > { %p373_p4 = scmp.eq.s32.totalorder %s2618_s24, 1  ;;  %p2621_p7 = scmp.ge.s32.totalorder %s2825_s23, 1 }
   0xd   : > { %s2958_s28 = scalar_select %p354_p1, %s2821_s22, %s356_s26  }
   0xe   : > { %p2960_p5 = por %p367_p2, %p366_p0  ;;  %p2964_p6 = por %p373_p4, %p372_p3 }
   0xf   : > { %3481 = sst [smem:[#allocation7_spill]] %s2958_s28  ;;  %p441_p8 = scmp.lt.s32.totalorder %s2825_s23, 3 }
  0x11   : > { %p442_p9 = pnand %p2621_p7, %p441_p8 }
  0x12   : > { %p489_p10 = scmp.lt.s32.totalorder (!%p442_p9), %s2943_s0, 1  ;;  %v500_v0 = vld [vmem:[%s3450_s3] sm:$0xf] (!%p442_p9)  ;;  %v2827_v1 = vmov (!%p442_p9), 0   ;;  %vm505_vm0 = vcmask (!%p442_p9), 1043456   ;;  %s3484_s1 = sld [smem:[#allocation8_spill]] (!%p442_p9)  ;;  %v533_v20 = vlaneseq (!%p442_p9) }
  0x13   : > { %445 = sbr.rel (%p442_p9) target bundleno = 1319 (0x527), region = 80  ;;  %2754 = vset.pattern.permute.xlu1 (!%p442_p9), %v2827_v1  ;;  %2755 = vset.pattern.permute.xlu0 (!%p442_p9), %v2827_v1  ;;  %v501_v2 = vld [vmem:[%s3451_s4] sm:$0xf] (!%p442_p9)  ;;  %v2828_v18 = vmov (!%p442_p9), 839922192   ;;  %s2830_s28 = smov (!%p442_p9), 17  }
  0x14   : > { %551 = vperm.xlu1 (!%p442_p9), %2754, %v500_v0   ;;  %v531_v19 = vunpack.c.l.s4 (!%p442_p9), %v2828_v18  ;;  %v2985_v24 = vshrl.u32 (!%p442_p9), %v533_v20, 7  ;;  %s3476_s16 = smov (!%p442_p9), 15   ;;  %s3472_s17 = smov (!%p442_p9), 1   ;;  %v2833_v39 = vmov (!%p442_p9), 0.0   ;;  %v579_v40 = vld [vmem:[%s3454_s7] sm:$0xf] (!%p442_p9) }
  0x15   : > { %690 = vmatprep.mubr.f32.mxu0 (!%p442_p9), %v2833_v39  ;;  %794 = vmatprep.mubr.f32.mxu1 (!%p442_p9), %v2833_v39  ;;  %s3466_s19 = smov (!%p442_p9), 113   ;;  %s3468_s24 = smov (!%p442_p9), 112   ;;  %v3041_v50 = vand.u32 (!%p442_p9), 127, %v533_v20  ;;  %vm616_vm4 = vcmask (!%p442_p9), 31744  }
  0x16   : > { %v532_v23 = vunpack.c.0.s8 (!%p442_p9), %v531_v19  ;;  %v607_v45 = vsub.s32 (!%p442_p9), 0, %v2985_v24  ;;  %v1016_v46 = vsub.s32 (!%p442_p9), 4, %v2985_v24  ;;  %s3485_s2 = sld [smem:[#allocation9_spill]] (!%p442_p9)  ;;  %v711_v54 = vsub.s32 (!%p442_p9), 1, %v2985_v24  ;;  %s3491_s27 = smov (!%p442_p9), 112  }
  0x17   : > { %vm602_vm1 = vcmp.lt.s32.totalorder (!%p442_p9), %v3041_v50, 17  ;;  %v919_v55 = vsub.s32 (!%p442_p9), 3, %v2985_v24  ;;  %vm914_vm2 = vcmp.lt.s32.totalorder (!%p442_p9), %v3041_v50, 1  ;;  %v1123_v58 = vsub.s32 (!%p442_p9), 5, %v2985_v24 }
  0x18   : > { %564 = vperm.xlu1 (!%p442_p9), %2754, %v501_v2   ;;  %v2988_v25 = vsub.s32 (!%p442_p9), %v532_v23, %v2985_v24  ;;  %vm706_vm3 = vcmp.lt.s32.totalorder (!%p442_p9), %v3041_v50, 16  ;;  %v815_v62 = vsub.s32 (!%p442_p9), 2, %v2985_v24  ;;  %vm1118_vm5 = vcmp.lt.s32.totalorder (!%p442_p9), %v3041_v50, 127 }
  0x19   : > { %vm810_vm6 = vcmp.lt.s32.totalorder (!%p442_p9), %v3041_v50, 15  ;;  %vm1222_vm7 = vcmp.lt.s32.totalorder (!%p442_p9), %v3041_v50, 113  ;;  %vm1326_vm8 = vcmp.lt.s32.totalorder (!%p442_p9), %v3041_v50, 112  ;;  %vm1430_vm9 = vcmp.lt.s32.totalorder (!%p442_p9), %v3041_v50, 111  ;;  %v1604_v50 = vld [vmem:[%s3458_s11] sm:$0xff] (!%p442_p9) }
  0x1a   : > { %s490_s18 = scalar_select %p489_p10, %s2943_s0, 1 }
  0x1c   : > { %s2702_s26 = sshll.u32 %s490_s18, 3  ;;  %s3464_s18 = smov 127   ;;  %v3034_v48 = vld [vmem:[%s3485_s2] sm:$0xff]  ;;  %v3039_v49 = vld [vmem:[%s3485_s2 + $0x8] sm:$0xff] }
  0x1d   : > { %s493_s22 = scalar_lea.vmem %s3484_s1, %s2702_s26  ;;  %s3470_s26 = smov 111   ;;  %v3045_v52 = vrot.slane %v3034_v48, %v607_v45  ;;  %v3048_v53 = vrot.slane %v3039_v49, %v607_v45  ;;  %v1017_v56 = vrot.slane %v3034_v48, %v1016_v46  ;;  %v1021_v57 = vrot.slane %v3039_v49, %v1016_v46 }
  0x1e   : > { %v499_v3 = vld [vmem:[%s493_s22] sm:$0xff]  ;;  %s3474_s22 = smov 16   ;;  %v3065_v2 = vrot.slane %v3034_v48, %v711_v54  ;;  %v3104_v18 = vrot.slane %v3039_v49, %v815_v62  ;;  %v3107_v19 = vrot.slane %v3034_v48, %v1123_v58 }
  0x1f   : > { %v503_v4 = vcombine.high %v499_v3, %v499_v3  ;;  %v506_v5 = vsel %vm505_vm0, %v499_v3, 0.0  ;;  %v511_v6 = vmul.f32 %v499_v3, %v499_v3 }
  0x21   : > { %v507_v7 = vsel %vm505_vm0, %v503_v4, 0.0  ;;  %v513_v8 = vcombine.high %v511_v6, %v511_v6  ;;  %v515_v9 = vsel %vm505_vm0, %v511_v6, 0.0  ;;  %v3071_v4 = vrot.slane %v3034_v48, %v919_v55  ;;  %v615_v6 = vld [vmem:[%s3452_s5] sm:$0xf] }
  0x22   : > { %v508_v10 = vadd.f32 %v507_v7, %v506_v5  ;;  %v3074_v5 = vrot.slane %v3039_v49, %v919_v55  ;;  %v3079_v7 = vcombine.low %v1017_v56, %v1021_v57 }
  0x23   : > { %v516_v11 = vsel %vm505_vm0, %v513_v8, 0.0  ;;  %v3083_v8 = vrot.slane %v3039_v49, %v1123_v58 }
  0x24   : > { %509 = vadd.xlane.f32.xlu0 %v508_v10  ;;  %v517_v12 = vadd.f32 %v516_v11, %v515_v9  ;;  %v1227_v10 = vsub.s32 6, %v2985_v24 }
  0x28   : > { %518 = vadd.xlane.f32.xlu0 %v517_v12 }
  0x93   : > { %v552_v26 = vpop.permute.xlu1 %551 }
  0x94   : > { %v559_v33 = vrot.slane %v552_v26, %v2988_v25 }
  0x97   : > { %v565_v31 = vpop.permute.xlu1 %564 }
  0x98   : > { %v572_v35 = vrot.slane %v565_v31, %v2988_v25 }
  0xb1   : > { %v510_v13 = vpop.xlane.xlu0 %509 }
  0xb2   : > { %v523_v14 = vmul.f32 0.00390625, %v510_v13 }
  0xb4   : > { %v525_v16 = vmul.f32 %v523_v14, %v523_v14  ;;  %v536_v27 = vrot.slane %v523_v14, %v2988_v25  ;;  %v3096_v14 = vrot.slane %v3034_v48, %v815_v62  ;;  %v2648_v62 = vld [vmem:[%s3452_s5 + $0x18] sm:$0xf] }
  0xb5   : > { %v519_v15 = vpop.xlane.xlu0 %518 }
  0xb6   : > { %v524_v17 = vmul.f32 0.00390625, %v519_v15  ;;  %v538_v29 = vsub.f32 %v499_v3, %v536_v27  ;;  %v3068_v3 = vrot.slane %v3039_v49, %v711_v54  ;;  %v3118_v27 = vrot.slane %v3039_v49, %v1227_v10  ;;  %v2644_v54 = vld [vmem:[%s3452_s5 + $0x14] sm:$0xf] }
  0xb8   : > { %v526_v21 = vsub.f32 %v524_v17, %v525_v16 }
  0xba   : > { %v527_v22 = vadd.f32 1e-05, %v526_v21  ;;  %v2628_v21 = vld [vmem:[%s3452_s5 + $0x4] sm:$0xf] }
  0xbc   : > { %2757 = vrsqrt.f32 %v527_v22 }
  0xc6   : > { %v2758_v28 = vpop.eup %2757 }
  0xc7   : > { %v546_v30 = vrot.slane %v2758_v28, %v2988_v25 }
  0xc9   : > { %v548_v32 = vmul.f32 %v546_v30, %v538_v29  ;;  %v1331_v29 = vsub.s32 7, %v2985_v24 }
  0xcb   : > { %v561_v34 = vmul.f32 %v559_v33, %v548_v32 }
  0xcd   : > { %v574_v36 = vadd.f32 %v572_v35, %v561_v34 }
  0xcf   : > { %v2994_v37 = vmax.f32 %v574_v36, 0.0  ;;  %v2632_v36 = vld [vmem:[%s3452_s5 + $0x8] sm:$0xf] }
  0xd1   : > { %702 = vrot.lane.b32.xlu1 %v2994_v37, %s3474_s22  ;;  %596 = vrot.lane.b32.xlu0 %v2994_v37, %s2830_s28  ;;  %v594_v38 = vcombine.high %v2994_v37, %v2994_v37  ;;  %v1026_v28 = vmul.f32 %v3079_v7, %v2994_v37 }
  0xd5   : > { %806 = vrot.lane.b32.xlu1 %v2994_v37, %s3476_s16  ;;  %912 = vrot.lane.b32.xlu0 %v594_v38, %s3472_s17 }
  0xd9   : > { %910 = vrot.lane.b32.xlu1 %v2994_v37, %s3472_s17  ;;  %1116 = vrot.lane.b32.xlu0 %v594_v38, %s3464_s18  ;;  %s3228_s17 = sld [smem:[#allocation2]] }
  0xdd   : > { %1114 = vrot.lane.b32.xlu1 %v2994_v37, %s3464_s18  ;;  %1220 = vrot.lane.b32.xlu0 %v594_v38, %s3466_s19  ;;  %s3487_s18 = smov 16  }
  0xe1   : > { %1324 = vrot.lane.b32.xlu0 %v594_v38, %s3468_s24  ;;  %598 = vrot.lane.b32.xlu1 %v594_v38, %s2830_s28 }
  0xe5   : > { %1428 = vrot.lane.b32.xlu0 %v594_v38, %s3470_s26  ;;  %704 = vrot.lane.b32.xlu1 %v594_v38, %s3474_s22  ;;  %s3492_s22 = smov 111  }
  0xe9   : > { %808 = vrot.lane.b32.xlu1 %v594_v38, %s3476_s16  ;;  %s3486_s16 = smov 15  }
  0xed   : > { %1218 = vrot.lane.b32.xlu1 %v2994_v37, %s3466_s19  ;;  %s3488_s19 = smov 1  }
  0xf1   : > { %1322 = vrot.lane.b32.xlu1 %v2994_v37, %s3468_s24  ;;  %s3489_s24 = smov 127  }
  0xf5   : > { %1426 = vrot.lane.b32.xlu1 %v2994_v37, %s3470_s26  ;;  %v2636_v37 = vld [vmem:[%s3452_s5 + $0xc] sm:$0xf]  ;;  %s3490_s26 = smov 113  }
  0xf9   : > { %582 = vperm.xlu1 %2754, %v579_v40   ;;  %v1030_v40 = vcombine.high %v1026_v28, %v1026_v28 }
 0x143   : > { %v703_v41 = vpop.permute.xlu1 %702  ;;  %v597_v43 = vpop.permute.xlu0 %596 }
 0x147   : > { %v3027_v42 = vpop.permute.xlu1 %806  ;;  %v913_v47 = vpop.permute.xlu0 %912 }
 0x14b   : > { %v911_v44 = vpop.permute.xlu1 %910  ;;  %v1117_v63 = vpop.permute.xlu0 %1116 }
 0x14c   : > { %v915_v11 = vsel %vm914_vm2, %v911_v44, %v913_v47  ;;  %v916_v15 = vsel %vm914_vm2, %v913_v47, %v911_v44  ;;  %v3157_v44 = vrot.slane %v3034_v48, %v1331_v29 }
 0x14d   : > { %v926_v22 = vmul.f32 %v3074_v5, %v915_v11  ;;  %v925_v30 = vmul.f32 %v3071_v4, %v916_v15  ;;  %v577_v15 = vstv %s3228_s17 }
 0x14f   : > { %v1115_v51 = vpop.permute.xlu1 %1114  ;;  %v1221_v23 = vpop.permute.xlu0 %1220 }
 0x150   : > { %v1120_v20 = vsel %vm1118_vm5, %v1117_v63, %v1115_v51  ;;  %v1119_v31 = vsel %vm1118_vm5, %v1115_v51, %v1117_v63  ;;  %v3166_v51 = vrot.slane %v3039_v49, %v1331_v29  ;;  %v2652_v63 = vld [vmem:[%s3452_s5 + $0x1c] sm:$0xf] }
 0x151   : > { %v1130_v34 = vmul.f32 %v3083_v8, %v1120_v20 }
 0x153   : > { %v599_v59 = vpop.permute.xlu1 %598  ;;  %v1325_v45 = vpop.permute.xlu0 %1324 }
 0x154   : > { %v603_v60 = vsel %vm602_vm1, %v597_v43, %v599_v59  ;;  %v604_v61 = vsel %vm602_vm1, %v599_v59, %v597_v43 }
 0x155   : > { %v613_v0 = vmul.f32 %v3045_v52, %v604_v61  ;;  %v614_v1 = vmul.f32 %v3048_v53, %v603_v60  ;;  %v3192_v60 = vld [vmem:[%s3485_s2 + $0x10] ss:$0 sm:$0xff]  ;;  %v3199_v61 = vld [vmem:[%s3485_s2 + $0x18] ss:$0 sm:$0xff] }
 0x157   : > { %2625 = vmatprep.subr.msk.mxu0 %vm505_vm0, %v614_v1  ;;  %v705_v9 = vpop.permute.xlu1 %704 }
 0x158   : > { %v707_v12 = vsel %vm706_vm3, %v703_v41, %v705_v9  ;;  %v708_v13 = vsel %vm706_vm3, %v705_v9, %v703_v41  ;;  %2626 = vmatpush1.msk.msra.mxu0 %vm505_vm0, %v613_v0  ;;  %v1129_v41 = vmul.f32 %v3107_v19, %v1119_v31  ;;  %v1429_v0 = vpop.permute.xlu0 %1428 }
 0x159   : > { %v717_v16 = vmul.f32 %v3065_v2, %v708_v13  ;;  %2627 = vmatmul.mubr.msk.f32.vlgmr.msra.gmra.mrb[0].mxu0 %vm616_vm4, %v615_v6  ;;  %v718_v17 = vmul.f32 %v3068_v3, %v707_v12  ;;  %v2658_v12 = vld [vmem:[%s3452_s5 + $0x20] sm:$0xf] }
 0x15a   : > { %898 = vmatprep.mubr.f32.mxu0 %v2833_v39  ;;  %v576_v13 = vld [vmem:[%s3453_s6] sm:$0xff] }
 0x15b   : > { %2629 = vmatprep.subr.msk.mxu1 %vm505_vm0, %v718_v17  ;;  %v809_v26 = vpop.permute.xlu1 %808  ;;  %v578_v17 = vmul.f32 %v577_v15, %v576_v13 }
 0x15c   : > { %v811_v32 = vsel %vm810_vm6, %v3027_v42, %v809_v26  ;;  %v812_v33 = vsel %vm810_vm6, %v809_v26, %v3027_v42  ;;  %2630 = vmatpush1.msk.msra.mxu1 %vm505_vm0, %v717_v16  ;;  %v3151_v42 = vrot.slane %v3034_v48, %v1227_v10  ;;  %v2640_v48 = vld [vmem:[%s3452_s5 + $0x10] sm:$0xf] }
 0x15d   : > { %v821_v35 = vmul.f32 %v3096_v14, %v812_v33  ;;  %v822_v24 = vmul.f32 %v3104_v18, %v811_v32  ;;  %2631 = vmatmul.mubr.msk.f32.vlgmr.msra.gmra.mrb[0].mxu1 %vm616_vm4, %v2628_v21  ;;  %2637 = vmatprep.subr.msk.mxu1 %vm505_vm0, %v926_v22 }
 0x15e   : > { %2638 = vmatpush1.msk.msra.mxu1 %vm505_vm0, %v925_v30  ;;  %1002 = vmatprep.mubr.f32.mxu1 %v2833_v39 }
 0x15f   : > { %2633 = vmatprep.subr.msk.mxu0 %vm505_vm0, %v822_v24  ;;  %2645 = vmatprep.subr.msk.mxu1 %vm505_vm0, %v1130_v34  ;;  %v1219_v38 = vpop.permute.xlu1 %1218 }
 0x160   : > { %v1224_v43 = vsel %vm1222_vm7, %v1221_v23, %v1219_v38  ;;  %2634 = vmatpush1.msk.msra.mxu0 %vm505_vm0, %v821_v35  ;;  %v1223_v46 = vsel %vm1222_vm7, %v1219_v38, %v1221_v23 }
 0x161   : > { %v1234_v47 = vmul.f32 %v3118_v27, %v1224_v43  ;;  %2635 = vmatmul.mubr.msk.f32.vlgmr.msra.gmra.mrb[2].mxu0 %vm616_vm4, %v2632_v36  ;;  %2639 = vmatmul.mubr.msk.f32.vlgmr.msra.gmra.mrb[2].mxu1 %vm616_vm4, %v2636_v37  ;;  %v1233_v49 = vmul.f32 %v3151_v42, %v1223_v46 }
 0x162   : > { %2641 = vmatprep.subr.msk.mxu0 %vm505_vm0, %v1030_v40  ;;  %2646 = vmatpush1.msk.msra.mxu1 %vm505_vm0, %v1129_v41 }
 0x163   : > { %2642 = vmatpush1.msk.msra.mxu0 %vm505_vm0, %v1026_v28  ;;  %v1323_v55 = vpop.permute.xlu1 %1322  ;;  %1102 = vmatprep.mubr.f32.mxu0 %v2833_v39 }
 0x164   : > { %2649 = vmatprep.subr.msk.mxu0 %vm505_vm0, %v1234_v47  ;;  %v1327_v56 = vsel %vm1326_vm8, %v1323_v55, %v1325_v45  ;;  %v1328_v57 = vsel %vm1326_vm8, %v1325_v45, %v1323_v55  ;;  %1206 = vmatprep.mubr.f32.mxu1 %v2833_v39 }
 0x165   : > { %v1337_v58 = vmul.f32 %v3157_v44, %v1327_v56  ;;  %v1338_v59 = vmul.f32 %v3166_v51, %v1328_v57  ;;  %2643 = vmatmul.mubr.msk.f32.vlgmr.msra.gmra.mrb[4].mxu0 %vm616_vm4, %v2640_v48  ;;  %2647 = vmatmul.mubr.msk.f32.vlgmr.msra.gmra.mrb[4].mxu1 %vm616_vm4, %v2644_v54 }
 0x166   : > { %2650 = vmatpush1.msk.msra.mxu0 %vm505_vm0, %v1233_v49  ;;  %1310 = vmatprep.mubr.f32.mxu0 %v2833_v39 }
 0x167   : > { %2653 = vmatprep.subr.msk.mxu1 %vm505_vm0, %v1338_v59  ;;  %v1427_v1 = vpop.permute.xlu1 %1426  ;;  %1414 = vmatprep.mubr.f32.mxu1 %v2833_v39 }
 0x168   : > { %v1431_v6 = vsel %vm1430_vm9, %v1427_v1, %v1429_v0  ;;  %v1432_v9 = vsel %vm1430_vm9, %v1429_v0, %v1427_v1  ;;  %2654 = vmatpush1.msk.msra.mxu1 %vm505_vm0, %v1337_v58 }
 0x169   : > { %v1441_v10 = vmul.f32 %v3192_v60, %v1431_v6  ;;  %v1442_v11 = vmul.f32 %v3199_v61, %v1432_v9  ;;  %2651 = vmatmul.mubr.msk.f32.vlgmr.msra.gmra.mrb[6].mxu0 %vm616_vm4, %v2648_v62  ;;  %2655 = vmatmul.mubr.msk.f32.vlgmr.msra.gmra.mrb[6].mxu1 %vm616_vm4, %v2652_v63 }
 0x16a   : > { %1518 = vmatprep.mubr.f32.mxu0 %v2833_v39  ;;  %1705 = vmatprep.mubr.f32.mxu1 %v2833_v39 }
 0x16b   : > { %2659 = vmatprep.subr.msk.mxu0 %vm505_vm0, %v1442_v11 }
 0x16c   : > { %2660 = vmatpush1.msk.msra.mxu0 %vm505_vm0, %v1441_v10 }
 0x16d   : > { %2661 = vmatmul.mubr.msk.f32.vlgmr.msra.gmra.mrb[8].mxu0 %vm616_vm4, %v2658_v12 }
 0x16e   : > { %1800 = vmatprep.mubr.f32.mxu0 %v2833_v39 }
 0x178   : > { %v583_v16 = vpop.permute.xlu1 %582 }
 0x179   : > { %v590_v20 = vrot.slane %v583_v16, %v2988_v25 }
 0x17b   : > { %v592_v26 = vadd.f32 %v590_v20, %v578_v17 }
 0x22c   : > { %v692_v21 = vpop.f32.mrb[0].mxu0 }
 0x22d   : > { %v694_v22 = vpop.f32.mrb[1].mxu0 }
 0x22e   : > { %v699_v23 = vcombine.low %v692_v21, %v694_v22 }
 0x230   : > { %v796_v28 = vpop.f32.mrb[0].mxu1  ;;  %v701_v30 = vadd.f32 %v699_v23, %v592_v26  ;;  %v1531_v26 = vld [vmem:[%s3456_s9] sm:$0xf] }
 0x231   : > { %v798_v29 = vpop.f32.mrb[1].mxu1 }
 0x232   : > { %v803_v31 = vcombine.low %v796_v28, %v798_v29  ;;  %v1530_v28 = vld [vmem:[%s3455_s8] sm:$0xf] }
 0x234   : > { %v805_v32 = vadd.f32 %v803_v31, %v701_v30  ;;  %v900_v33 = vpop.f32.mrb[2].mxu0  ;;  %v1004_v34 = vpop.f32.mrb[2].mxu1 }
 0x235   : > { %v902_v35 = vpop.f32.mrb[3].mxu0  ;;  %v1006_v24 = vpop.f32.mrb[3].mxu1 }
 0x236   : > { %v907_v36 = vcombine.low %v900_v33, %v902_v35  ;;  %v1011_v37 = vcombine.low %v1004_v34, %v1006_v24 }
 0x238   : > { %v909_v38 = vadd.f32 %v907_v36, %v805_v32  ;;  %v1104_v40 = vpop.f32.mrb[4].mxu0  ;;  %v1208_v41 = vpop.f32.mrb[4].mxu1 }
 0x239   : > { %v1106_v43 = vpop.f32.mrb[5].mxu0  ;;  %v1210_v45 = vpop.f32.mrb[5].mxu1 }
 0x23a   : > { %v1013_v46 = vadd.f32 %v1011_v37, %v909_v38  ;;  %v1111_v47 = vcombine.low %v1104_v40, %v1106_v43  ;;  %v1215_v48 = vcombine.low %v1208_v41, %v1210_v45 }
 0x23c   : > { %v1113_v54 = vadd.f32 %v1111_v47, %v1013_v46  ;;  %v1312_v55 = vpop.f32.mrb[6].mxu0  ;;  %v1416_v49 = vpop.f32.mrb[6].mxu1 }
 0x23d   : > { %v1314_v56 = vpop.f32.mrb[7].mxu0  ;;  %v1418_v57 = vpop.f32.mrb[7].mxu1 }
 0x23e   : > { %v1217_v58 = vadd.f32 %v1215_v48, %v1113_v54  ;;  %v1319_v59 = vcombine.low %v1312_v55, %v1314_v56  ;;  %v1423_v62 = vcombine.low %v1416_v49, %v1418_v57  ;;  %v1606_v49 = vld [vmem:[%s3459_s12] sm:$0xf] }
 0x240   : > { %v1321_v63 = vadd.f32 %v1319_v59, %v1217_v58  ;;  %v1520_v0 = vpop.f32.mrb[8].mxu0 }
 0x241   : > { %v1522_v1 = vpop.f32.mrb[9].mxu0 }
 0x242   : > { %v1425_v6 = vadd.f32 %v1423_v62, %v1321_v63  ;;  %v1527_v9 = vcombine.low %v1520_v0, %v1522_v1 }
 0x244   : > { %v1529_v10 = vadd.f32 %v1527_v9, %v1425_v6 }
 0x246   : > { %v1533_v11 = vcombine.high %v1529_v10, %v1529_v10  ;;  %v1540_v12 = vmul.f32 %v1529_v10, %v1529_v10  ;;  %v1535_v13 = vsel %vm505_vm0, %v1529_v10, 0.0 }
 0x248   : > { %v1536_v16 = vsel %vm505_vm0, %v1533_v11, 0.0  ;;  %v1542_v17 = vcombine.high %v1540_v12, %v1540_v12  ;;  %v1544_v21 = vsel %vm505_vm0, %v1540_v12, 0.0 }
 0x249   : > { %v1537_v20 = vadd.f32 %v1536_v16, %v1535_v13 }
 0x24a   : > { %v1545_v22 = vsel %vm505_vm0, %v1542_v17, 0.0  ;;  %v1631_v17 = vld [vmem:[%s3457_s10] sm:$0xf] }
 0x24b   : > { %1538 = vadd.xlane.f32.xlu0 %v1537_v20  ;;  %v1546_v23 = vadd.f32 %v1545_v22, %v1544_v21 }
 0x24d   : > { %1547 = vadd.xlane.f32.xlu1 %v1546_v23 }
 0x25e   : > { %1592 = vperm.xlu1 %2754, %v1531_v26  }
 0x261   : > { %1579 = vperm.xlu0 %2755, %v1530_v28   ;;  %v2665_v28 = vld [vmem:[%s3457_s10 + $0x4] sm:$0xf] }
 0x2d8   : > { %v1539_v29 = vpop.xlane.xlu0 %1538 }
 0x2d9   : > { %v1551_v30 = vmul.f32 0.00390625, %v1539_v29 }
 0x2da   : > { %v1548_v31 = vpop.xlane.xlu1 %1547 }
 0x2db   : > { %v1553_v32 = vmul.f32 %v1551_v30, %v1551_v30  ;;  %v1552_v33 = vmul.f32 0.00390625, %v1548_v31  ;;  %v1564_v24 = vrot.slane %v1551_v30, %v2988_v25 }
 0x2dd   : > { %v1554_v34 = vsub.f32 %v1552_v33, %v1553_v32  ;;  %v1566_v38 = vsub.f32 %v1529_v10, %v1564_v24 }
 0x2de   : > { %v1593_v43 = vpop.permute.xlu1 %1592 }
 0x2df   : > { %v1555_v35 = vadd.f32 1e-05, %v1554_v34  ;;  %v1600_v46 = vrot.slane %v1593_v43, %v2988_v25 }
 0x2e0   : > { %v1580_v36 = vpop.permute.xlu0 %1579 }
 0x2e1   : > { %2759 = vrsqrt.f32 %v1555_v35  ;;  %v1587_v41 = vrot.slane %v1580_v36, %v2988_v25 }
 0x2eb   : > { %v2760_v37 = vpop.eup %2759 }
 0x2ec   : > { %v1574_v40 = vrot.slane %v2760_v37, %v2988_v25 }
 0x2ee   : > { %v1576_v45 = vmul.f32 %v1574_v40, %v1566_v38 }
 0x2f0   : > { %v1589_v47 = vmul.f32 %v1587_v41, %v1576_v45  ;;  %v2685_v41 = vld [vmem:[%s3457_s10 + $0x18] sm:$0xf] }
 0x2f2   : > { %v1602_v48 = vadd.f32 %v1600_v46, %v1589_v47  ;;  %v2689_v47 = vld [vmem:[%s3457_s10 + $0x1c] sm:$0xf] }
 0x2f4   : > { %v1603_v54 = vmax.f32 %v1602_v48, 0.0 }
 0x2f6   : > { %1623 = vrot.lane.b32.xlu1 %v1603_v54, %s2830_s28  ;;  %v1621_v55 = vcombine.high %v1603_v54, %v1603_v54  ;;  %v2002_v10 = vmul.f32 %v1603_v54, %v3079_v7 }
 0x2f8   : > { %1814 = vrot.lane.b32.xlu0 %v1621_v55, %s3486_s16 }
 0x2fa   : > { %1717 = vrot.lane.b32.xlu1 %v1603_v54, %s3487_s18 }
 0x2fc   : > { %1909 = vrot.lane.b32.xlu0 %v1621_v55, %s3488_s19 }
 0x2fe   : > { %1812 = vrot.lane.b32.xlu1 %v1603_v54, %s3486_s16 }
 0x300   : > { %2092 = vrot.lane.b32.xlu0 %v1621_v55, %s3489_s24 }
 0x302   : > { %1907 = vrot.lane.b32.xlu1 %v1603_v54, %s3488_s19  ;;  %s486_s19 = sand.u32 1, %s2817_s21  }
 0x303   : > { %s2545_s16 = scalar_lea.sflag [#allocation4], %s486_s19 }
 0x304   : > { %2187 = vrot.lane.b32.xlu0 %v1621_v55, %s3490_s26 }
 0x306   : > { %1625 = vrot.lane.b32.xlu1 %v1621_v55, %s2830_s28  ;;  %s2622_s28 = sshll.u32 %s486_s19, 3 }
 0x308   : > { %2282 = vrot.lane.b32.xlu0 %v1621_v55, %s3491_s27 }
 0x30a   : > { %1719 = vrot.lane.b32.xlu1 %v1621_v55, %s3487_s18  ;;  %s2703_s18 = sshll.u32 %s2943_s0, 7  ;;  %s2838_s0 = smov [#allocation3]  }
 0x30c   : > { %2377 = vrot.lane.b32.xlu0 %v1621_v55, %s3492_s22 }
 0x30e   : > { %2090 = vrot.lane.b32.xlu1 %v1603_v54, %s3489_s24  ;;  %s488_s24 = scalar_lea.vmem [#allocation3], %s2622_s28  ;;  %s2767_s28 = sshll.u32 %s2838_s0, 4  ;;  %s2768_s28 = int_to_ptr.vmem [resolvable:$false] %s2767_s28 }
 0x30f   : > { %s2769_s2 = scalar_lea.vmem %s2768_s28, 256 }
 0x312   : > { %2185 = vrot.lane.b32.xlu1 %v1603_v54, %s3490_s26  ;;  %s2559_s26 = sshll.u32 %s488_s24, 4  ;;  %s3407_s26 = int_to_ptr.vmem [resolvable:$true] %s2559_s26 }
 0x313   : > { %s2763_s1 = scalar_lea.vmem %s3407_s26, 128  ;;  %p2770_p0 = scmp.lt.s32.totalorder %s3407_s26, %s2768_s28 }
 0x314   : > { %p2764_p11 = scmp.ne.s32.totalorder %s3407_s26, %s2763_s1  ;;  %p2771_p1 = scmp.lt.s32.totalorder %s2769_s2, %s2763_s1 }
 0x316   : > { %2280 = vrot.lane.b32.xlu1 %v1603_v54, %s3491_s27  ;;  %p2765_p12 = pnand %p2764_p11, %p2960_p5  ;;  %p2772_p2 = por %p2771_p1, %p2770_p0 }
 0x318   : > { %p2766_p13 = pneg %p2765_p12 }
 0x31a   : > { %2375 = vrot.lane.b32.xlu1 %v1603_v54, %s3492_s22  ;;  %s3405_s22 = scalar_lea.hbm %s3462_s15, %s2703_s18  ;;  %p2773_p3 = pnand %p2772_p2, %p2766_p13 }
 0x31e   : > { %1609 = vperm.xlu1 %2754, %v1606_v49  }
 0x368   : > { %v1624_v56 = vpop.permute.xlu1 %1623 }
 0x36a   : > { %v1815_v58 = vpop.permute.xlu0 %1814 }
 0x36c   : > { %v1718_v57 = vpop.permute.xlu1 %1717 }
 0x36e   : > { %v1910_v62 = vpop.permute.xlu0 %1909 }
 0x370   : > { %v1813_v59 = vpop.permute.xlu1 %1812 }
 0x371   : > { %v1816_v1 = vsel %vm810_vm6, %v1813_v59, %v1815_v58  ;;  %v1817_v11 = vsel %vm810_vm6, %v1815_v58, %v1813_v59 }
 0x372   : > { %v2093_v12 = vpop.permute.xlu0 %2092  ;;  %v1819_v20 = vmul.f32 %v1816_v1, %v3104_v18  ;;  %v1818_v22 = vmul.f32 %v1817_v11, %v3096_v14 }
 0x374   : > { %v1908_v63 = vpop.permute.xlu1 %1907 }
 0x375   : > { %v1912_v14 = vsel %vm914_vm2, %v1910_v62, %v1908_v63 }
 0x376   : > { %v1913_v32 = vmul.f32 %v1912_v14, %v3071_v4  ;;  %v2677_v4 = vld [vmem:[%s3457_s10 + $0x10] sm:$0xf] }
 0x378   : > { %v1626_v0 = vpop.permute.xlu1 %1625 }
 0x379   : > { %v1627_v6 = vsel %vm602_vm1, %v1624_v56, %v1626_v0  ;;  %v1628_v9 = vsel %vm602_vm1, %v1626_v0, %v1624_v56 }
 0x37a   : > { %v1629_v13 = vmul.f32 %v1628_v9, %v3045_v52  ;;  %v1630_v16 = vmul.f32 %v1627_v6, %v3048_v53  ;;  %v2006_v52 = vcombine.high %v2002_v10, %v2002_v10  ;;  %v1911_v53 = vsel %vm914_vm2, %v1908_v63, %v1910_v62 }
 0x37b   : > { %v1914_v30 = vmul.f32 %v1911_v53, %v3074_v5  ;;  %v2673_v5 = vld [vmem:[%s3457_s10 + $0xc] sm:$0xf] }
 0x37c   : > { %2662 = vmatprep.subr.msk.mxu1 %vm505_vm0, %v1630_v16  ;;  %v1720_v21 = vpop.permute.xlu1 %1719 }
 0x37d   : > { %v1721_v7 = vsel %vm706_vm3, %v1718_v57, %v1720_v21  ;;  %v1722_v23 = vsel %vm706_vm3, %v1720_v21, %v1718_v57  ;;  %2663 = vmatpush1.msk.msra.mxu1 %vm505_vm0, %v1629_v13 }
 0x37e   : > { %v1723_v26 = vmul.f32 %v1722_v23, %v3065_v2  ;;  %v1724_v18 = vmul.f32 %v1721_v7, %v3068_v3  ;;  %2664 = vmatmul.mubr.msk.f32.vlgmr.msra.gmra.mrb[8].mxu1 %vm616_vm4, %v1631_v17  ;;  %2670 = vmatprep.subr.msk.mxu1 %vm505_vm0, %v1819_v20  ;;  %v2669_v2 = vld [vmem:[%s3457_s10 + $0x8] sm:$0xf]  ;;  %v2188_v3 = vpop.permute.xlu0 %2187 }
 0x37f   : > { %2671 = vmatpush1.msk.msra.mxu1 %vm505_vm0, %v1818_v22  ;;  %1895 = vmatprep.mubr.f32.mxu1 %v2833_v39 }
 0x380   : > { %2666 = vmatprep.subr.msk.mxu0 %vm505_vm0, %v1724_v18  ;;  %2678 = vmatprep.subr.msk.mxu1 %vm505_vm0, %v2006_v52  ;;  %v2091_v29 = vpop.permute.xlu1 %2090 }
 0x381   : > { %v2095_v31 = vsel %vm1118_vm5, %v2093_v12, %v2091_v29  ;;  %2667 = vmatpush1.msk.msra.mxu0 %vm505_vm0, %v1723_v26  ;;  %v2094_v33 = vsel %vm1118_vm5, %v2091_v29, %v2093_v12 }
 0x382   : > { %v2097_v34 = vmul.f32 %v2095_v31, %v3083_v8  ;;  %2668 = vmatmul.mubr.msk.f32.vlgmr.msra.gmra.mrb[10].mxu0 %vm616_vm4, %v2665_v28  ;;  %2672 = vmatmul.mubr.msk.f32.vlgmr.msra.gmra.mrb[10].mxu1 %vm616_vm4, %v2669_v2  ;;  %v2096_v8 = vmul.f32 %v2094_v33, %v3107_v19  ;;  %v2283_v37 = vpop.permute.xlu0 %2282  ;;  %v2681_v19 = vld [vmem:[%s3457_s10 + $0x14] sm:$0xf] }
 0x383   : > { %2674 = vmatprep.subr.msk.mxu0 %vm505_vm0, %v1914_v30  ;;  %2679 = vmatpush1.msk.msra.mxu1 %vm505_vm0, %v2002_v10 }
 0x384   : > { %2675 = vmatpush1.msk.msra.mxu0 %vm505_vm0, %v1913_v32  ;;  %v2186_v35 = vpop.permute.xlu1 %2185  ;;  %1990 = vmatprep.mubr.f32.mxu0 %v2833_v39 }
 0x385   : > { %2682 = vmatprep.subr.msk.mxu0 %vm505_vm0, %v2097_v34  ;;  %v2189_v24 = vsel %vm1222_vm7, %v2186_v35, %v2188_v3  ;;  %v2190_v36 = vsel %vm1222_vm7, %v2188_v3, %v2186_v35  ;;  %2078 = vmatprep.mubr.f32.mxu1 %v2833_v39 }
 0x386   : > { %v2191_v38 = vmul.f32 %v2189_v24, %v3151_v42  ;;  %v2192_v40 = vmul.f32 %v2190_v36, %v3118_v27  ;;  %2676 = vmatmul.mubr.msk.f32.vlgmr.msra.gmra.mrb[12].mxu0 %vm616_vm4, %v2673_v5  ;;  %2680 = vmatmul.mubr.msk.f32.vlgmr.msra.gmra.mrb[12].mxu1 %vm616_vm4, %v2677_v4  ;;  %v2378_v48 = vpop.permute.xlu0 %2377 }
 0x387   : > { %2683 = vmatpush1.msk.msra.mxu0 %vm505_vm0, %v2096_v8  ;;  %2173 = vmatprep.mubr.f32.mxu0 %v2833_v39 }
 0x388   : > { %2686 = vmatprep.subr.msk.mxu1 %vm505_vm0, %v2192_v40  ;;  %v2281_v42 = vpop.permute.xlu1 %2280  ;;  %2268 = vmatprep.mubr.f32.mxu1 %v2833_v39 }
 0x389   : > { %v2284_v27 = vsel %vm1326_vm8, %v2281_v42, %v2283_v37  ;;  %v2285_v43 = vsel %vm1326_vm8, %v2283_v37, %v2281_v42  ;;  %2687 = vmatpush1.msk.msra.mxu1 %vm505_vm0, %v2191_v38  ;;  %v2471_v42 = vld [vmem:[%s3461_s14] sm:$0xf] }
 0x38a   : > { %v2286_v45 = vmul.f32 %v2284_v27, %v3157_v44  ;;  %v2287_v46 = vmul.f32 %v2285_v43, %v3166_v51  ;;  %2684 = vmatmul.mubr.msk.f32.vlgmr.msra.gmra.mrb[14].mxu0 %vm616_vm4, %v2681_v19  ;;  %2688 = vmatmul.mubr.msk.f32.vlgmr.msra.gmra.mrb[14].mxu1 %vm616_vm4, %v2685_v41  ;;  %v2470_v27 = vld [vmem:[%s3460_s13] sm:$0xf] }
 0x38b   : > { %2363 = vmatprep.mubr.f32.mxu0 %v2833_v39  ;;  %2458 = vmatprep.mubr.f32.mxu1 %v2833_v39  ;;  %v2693_v39 = vld [vmem:[%s3457_s10 + $0x20] sm:$0xf] }
 0x38c   : > { %2690 = vmatprep.subr.msk.mxu0 %vm505_vm0, %v2287_v46  ;;  %v2376_v54 = vpop.permute.xlu1 %2375 }
 0x38d   : > { %v2379_v44 = vsel %vm1430_vm9, %v2376_v54, %v2378_v48  ;;  %v2380_v51 = vsel %vm1430_vm9, %v2378_v48, %v2376_v54  ;;  %2691 = vmatpush1.msk.msra.mxu0 %vm505_vm0, %v2286_v45 }
 0x38e   : > { %v2381_v55 = vmul.f32 %v3192_v60, %v2379_v44  ;;  %v2382_v49 = vmul.f32 %v3199_v61, %v2380_v51  ;;  %2692 = vmatmul.mubr.msk.f32.vlgmr.msra.gmra.mrb[16].mxu0 %vm616_vm4, %v2689_v47  ;;  %v1605_v60 = vmul.f32 %v1604_v50, %v577_v15 }
 0x390   : > { %2694 = vmatprep.subr.msk.mxu1 %vm505_vm0, %v2382_v49 }
 0x391   : > { %2695 = vmatpush1.msk.msra.mxu1 %vm505_vm0, %v2381_v55 }
 0x392   : > { %2696 = vmatmul.mubr.msk.f32.vlgmr.msra.gmra.mrb[16].mxu1 %vm616_vm4, %v2693_v39 }
 0x39d   : > { %v1610_v56 = vpop.permute.xlu1 %1609 }
 0x39e   : > { %v1617_v61 = vrot.slane %v1610_v56, %v2988_v25 }
 0x3a0   : > { %v1619_v62 = vadd.f32 %v1617_v61, %v1605_v60 }
 0x451   : > { %v1707_v57 = vpop.f32.mrb[8].mxu1 }
 0x452   : > { %v1709_v58 = vpop.f32.mrb[9].mxu1 }
 0x453   : > { %v1714_v59 = vcombine.low %v1707_v57, %v1709_v58 }
 0x455   : > { %v1802_v63 = vpop.f32.mrb[10].mxu0  ;;  %v1897_v0 = vpop.f32.mrb[10].mxu1  ;;  %v1716_v9 = vadd.f32 %v1714_v59, %v1619_v62 }
 0x456   : > { %v1804_v1 = vpop.f32.mrb[11].mxu0  ;;  %v1899_v6 = vpop.f32.mrb[11].mxu1 }
 0x457   : > { %v1809_v10 = vcombine.low %v1802_v63, %v1804_v1  ;;  %v1904_v11 = vcombine.low %v1897_v0, %v1899_v6 }
 0x459   : > { %v1811_v12 = vadd.f32 %v1809_v10, %v1716_v9  ;;  %v1992_v13 = vpop.f32.mrb[12].mxu0  ;;  %v2080_v16 = vpop.f32.mrb[12].mxu1 }
 0x45a   : > { %v1994_v17 = vpop.f32.mrb[13].mxu0  ;;  %v2082_v20 = vpop.f32.mrb[13].mxu1 }
 0x45b   : > { %v1906_v21 = vadd.f32 %v1904_v11, %v1811_v12  ;;  %v1999_v15 = vcombine.low %v1992_v13, %v1994_v17  ;;  %v2087_v22 = vcombine.low %v2080_v16, %v2082_v20 }
 0x45d   : > { %v2001_v7 = vadd.f32 %v1999_v15, %v1906_v21  ;;  %v2175_v23 = vpop.f32.mrb[14].mxu0  ;;  %v2270_v52 = vpop.f32.mrb[14].mxu1 }
 0x45e   : > { %v2177_v53 = vpop.f32.mrb[15].mxu0  ;;  %v2272_v26 = vpop.f32.mrb[15].mxu1 }
 0x45f   : > { %v2089_v18 = vadd.f32 %v2087_v22, %v2001_v7  ;;  %v2182_v14 = vcombine.low %v2175_v23, %v2177_v53  ;;  %v2277_v28 = vcombine.low %v2270_v52, %v2272_v26 }
 0x461   : > { %v2184_v2 = vadd.f32 %v2182_v14, %v2089_v18  ;;  %v2365_v3 = vpop.f32.mrb[16].mxu0 }
 0x462   : > { %v2367_v29 = vpop.f32.mrb[17].mxu0 }
 0x463   : > { %v2279_v30 = vadd.f32 %v2277_v28, %v2184_v2  ;;  %v2372_v31 = vcombine.low %v2365_v3, %v2367_v29 }
 0x465   : > { %v2374_v32 = vadd.f32 %v2372_v31, %v2279_v30  ;;  %v2460_v33 = vpop.f32.mrb[16].mxu1 }
 0x466   : > { %v2462_v34 = vpop.f32.mrb[17].mxu1 }
 0x467   : > { %v2467_v5 = vcombine.low %v2460_v33, %v2462_v34 }
 0x469   : > { %v2469_v4 = vadd.f32 %v2467_v5, %v2374_v32 }
 0x46b   : > { %v2473_v35 = vcombine.high %v2469_v4, %v2469_v4  ;;  %v2480_v8 = vmul.f32 %v2469_v4, %v2469_v4  ;;  %v2475_v24 = vsel %vm505_vm0, %v2469_v4, 0.0 }
 0x46d   : > { %v2476_v36 = vsel %vm505_vm0, %v2473_v35, 0.0  ;;  %v2482_v37 = vcombine.high %v2480_v8, %v2480_v8  ;;  %v2484_v40 = vsel %vm505_vm0, %v2480_v8, 0.0 }
 0x46e   : > { %v2477_v38 = vadd.f32 %v2476_v36, %v2475_v24 }
 0x46f   : > { %v2485_v19 = vsel %vm505_vm0, %v2482_v37, 0.0 }
 0x470   : > { %2478 = vadd.xlane.f32.xlu0 %v2477_v38  ;;  %v2486_v41 = vadd.f32 %v2485_v19, %v2484_v40 }
 0x472   : > { %2487 = vadd.xlane.f32.xlu1 %v2486_v41 }
 0x483   : > { %2532 = vperm.xlu1 %2754, %v2471_v42  }
 0x486   : > { %2519 = vperm.xlu0 %2755, %v2470_v27  }
 0x4fd   : > { %v2479_v43 = vpop.xlane.xlu0 %2478 }
 0x4fe   : > { %v2491_v45 = vmul.f32 0.00390625, %v2479_v43 }
 0x4ff   : > { %v2488_v46 = vpop.xlane.xlu1 %2487 }
 0x500   : > { %v2493_v47 = vmul.f32 %v2491_v45, %v2491_v45  ;;  %v2492_v48 = vmul.f32 0.00390625, %v2488_v46  ;;  %v2504_v51 = vrot.slane %v2491_v45, %v2988_v25 }
 0x502   : > { %v2494_v54 = vsub.f32 %v2492_v48, %v2493_v47  ;;  %v2506_v39 = vsub.f32 %v2469_v4, %v2504_v51 }
 0x503   : > { %v2533_v56 = vpop.permute.xlu1 %2532 }
 0x504   : > { %v2495_v44 = vadd.f32 1e-05, %v2494_v54  ;;  %v2540_v57 = vrot.slane %v2533_v56, %v2988_v25 }
 0x505   : > { %v2520_v49 = vpop.permute.xlu0 %2519 }
 0x506   : > { %2761 = vrsqrt.f32 %v2495_v44  ;;  %v2527_v61 = vrot.slane %v2520_v49, %v2988_v25 }
 0x510   : > { %v2762_v55 = vpop.eup %2761 }
 0x511   : > { %v2514_v50 = vrot.slane %v2762_v55, %v2988_v25 }
 0x513   : > { %v2516_v60 = vmul.f32 %v2514_v50, %v2506_v39 }
 0x515   : > { %v2529_v58 = vmul.f32 %v2527_v61, %v2516_v60 }
 0x517   : > { %v2542_v59 = vadd.f32 %v2540_v57, %v2529_v58 }
 0x519   : > { %2543 = vst [vmem:[%s488_s24] sm:$0xff] %v2542_v59 }
 0x51a   : > { %2776 = shalt.err (!%p2773_p3)
}
 0x51b   : > { %s2777_s19 = scalar_lea.hbm %s3405_s22, 128  ;;  %s2781_s17 = scalar_lea.hbm %s3462_s15, 256 }
 0x51c   : > { %p2778_p4 = scmp.ne.s32.totalorder %s3405_s22, %s2777_s19  ;;  %p2782_p9 = scmp.lt.u32.totalorder %s3405_s22, %s3462_s15 }
 0x51d   : > { %p2783_p10 = scmp.lt.u32.totalorder %s2781_s17, %s2777_s19  ;;  %p2785_p12 = scmp.lt.u32.totalorder %s2777_s19, %s3405_s22 }
 0x51e   : > { %p2779_p7 = pnand %p2778_p4, %p2960_p5 }
 0x51f   : > { %p2784_p11 = por %p2783_p10, %p2782_p9 }
 0x520   : > { %p2780_p8 = pneg %p2779_p7 }
 0x521   : > { %p2786_p13 = por %p2785_p12, %p2784_p11 }
 0x523   : > { %p2787_p0 = pnand %p2786_p13, %p2780_p8 }
 0x525   : > { %2790 = shalt.err (!%p2787_p0)
}
 0x526   : > { %2704 = dma.vmem_to_hbm [thread:$0]  (%p2960_p5), %s3407_s26, 128, %s3405_s22, %s2545_s16  }
 0x527 PF: > { %p2710_p1 = scmp.ge.s32.totalorder %s2825_s23, 2  ;;  %s2571_s1 = sand.u32 1, %s2813_s20  }
 0x528   : > { %s2572_s2 = scalar_lea.sflag [#allocation4], %s2571_s1 }
 0x529   : > { %p2707_p2 = pnand %p2710_p1, %p2964_p6 }
 0x52b   : > { %2808 = dma.done.wait (!%p2707_p2), %s2572_s2, 128  }
 0x52c   : > { %2810 = vsyncadd (!%p2707_p2), %s2572_s2, 4294967168  ;;  %s3493_s28 = sld [smem:[#allocation6_spill]]  ;;  %s3494_s22 = sld [smem:[#allocation7_spill]] }
 0x52d   : > { %p26_p3 = scmp.ge.s32.totalorder %s2947_s25, 4   ;;  %s3495_s20 = smov %s2817_s21 }
 0x52e   : > { %s3497_s23 = smov %s2947_s25 }
 0x52f   :  { %28 = sbr.rel (!%p26_p3) target bundleno = 7 (0x7), region = 131 }
 0x532   : > { %s3496_s21 = smov %s3493_s28 }
 0x536   :  { %2577 = vsyncpa [#allocation4], 1 }
 0x537   :  { %2579 = vsyncpa [#allocation4 + $0x1], 1 }

</bundles_post_ra>
